<compile_context>
chip_gen: v6e
topology: v6e:2x2x1
jax: 0.10.0
libtpu: 0.0.40
codegen_flags: <defaults>
</compile_context>

<pallas_src>
import numpy as np
import jax
import jax.numpy as jnp
from jax import lax
from jax.experimental import pallas as pl
from jax.experimental.pallas import tpu as pltpu

_inner_mlp_mult = 2
_BN_EPS = 1e-5


# ------------------------------------------------------------------------------------------
# In-kernel helpers
# ------------------------------------------------------------------------------------------
def _dot(a, b):
    return jnp.dot(a, b, preferred_element_type=jnp.float32)


def _mlp(blocks, w, shift, relu=True):
    # y = [relu]( concat(blocks, -1) @ w + shift ), channel concat folded into row-sliced
    # partial matmuls (all row offsets are multiples of 8 -> tile aligned).
    off, acc = 0, None
    for blk in blocks:
        c = blk.shape[-1]
        part = _dot(blk, w[off:off + c, :])
        acc = part if acc is None else acc + part
        off += c
    assert off == w.shape[0], (off, w.shape)      # trace-time shape check only
    acc = acc + shift
    return jnp.maximum(acc, 0.0) if relu else acc


# ------------------------------------------------------------------------------------------
# The single fused, batched forward kernel (grid axis = graph in batch)
# ------------------------------------------------------------------------------------------
def _edge_cycle_forward_kernel(feats_r, ginit_r, gbig_r, gcye_r, gout_r,
                               wi1_r, bi1_r, wi2_r, bi2_r,
                               wl1_r, sl1_r, wl2_r, sl2_r,
                               wfin_r, sfin_r, out_r):
    Em = feats_r.shape[-1]          # embedding dim
    H = wi2_r.shape[-1]             # hidden dim
    H2 = 2 * H
    ERp = gbig_r.shape[-1]          # padded edge-layer rows
    CYRp = gcye_r.shape[-1]         # padded cycle-layer rows
    D = wfin_r.shape[-1]            # dense dim
    L = wl1_r.shape[0]              # number of conv layers

    feats = feats_r[0]                                  # [node_pad + edge_pad, Em]
    ginit = _dot(ginit_r[...], feats)                   # all init gathers in one dot
    wi1, bi1 = wi1_r[...], bi1_r[...]
    wi2, bi2 = wi2_r[...], bi2_r[...]

    # ---------------- initial edge representation ----------------
    n2e, e0e = ginit[0:ERp], ginit[ERp:2 * ERp]
    h = _mlp([n2e, e0e], wi1[0:2 * Em], bi1[0:1])
    edge_rep = _mlp([h], wi2[0:H2], bi2[0:1])           # [ERp, H]

    # ---------------- initial cycle representation ----------------
    c1 = ginit[2 * ERp:2 * ERp + CYRp]
    c2 = ginit[2 * ERp + CYRp:2 * ERp + 2 * CYRp]
    h = _mlp([c1, c2], wi1[2 * Em:4 * Em], bi1[1:2])
    cycle_rep = _mlp([h], wi2[H2:2 * H2], bi2[1:2])     # [CYRp, H]

    gbig = gbig_r[...]
    gcye = gcye_r[...]
    o_cy = 4 * ERp
    o_ec = o_cy + 4 * CYRp

    # ---------------- ConvLayer stack ----------------
    def conv_layer(l, carry):
        er, cy = carry
        w1, s1 = wl1_r[l], sl1_r[l]                     # [21H, 2H], [8, 2H]
        w2, s2 = wl2_r[l], sl2_r[l]                     # [8H, H],   [8, H]

        gb = _dot(gbig, er)                             # every composed gather from edge_rep
        gc = _dot(gcye, cy)                             # B1cye / B2cye gathers from cycle_rep
        gee = [gb[k * ERp:(k + 1) * ERp] for k in range(4)]
        cyb = [gb[o_cy + k * CYRp:o_cy + (k + 1) * CYRp] for k in range(4)]
        ecb = [gb[o_ec + k * ERp:o_ec + (k + 1) * ERp] for k in range(8)]

        # Edge_edge
        h = _mlp([er] + gee, w1[0:5 * H], s1[0:1])
        e_a = _mlp([h], w2[0:H2], s2[0:1])

        # Edge_Cycle : edge mlp (channel order matches the original cat of gathered blocks)
        blocks = [er] + ecb[0:4] + [gc[0:ERp]] + ecb[4:8] + [gc[ERp:2 * ERp]]
        h = _mlp(blocks, w1[5 * H:16 * H], s1[1:2])
        e_b = _mlp([h], w2[H2:2 * H2], s2[1:2])

        # Edge_Cycle : cycle mlp
        h = _mlp(cyb + [cy], w1[16 * H:21 * H], s1[2:3])
        cy_new = _mlp([h], w2[2 * H2:3 * H2], s2[2:3])

        # ConvLayer combine
        er_new = _mlp([e_a, e_b], w2[3 * H2:4 * H2], s2[3:4])
        return (er_new, cy_new)

    edge_rep, cycle_rep = lax.fori_loop(0, L, conv_layer, (edge_rep, cycle_rep))

    # ---------------- readout (global add pool folded host-side) + final MLP ----------------
    gout = gout_r[...]
    p1 = _dot(gout[0:8], edge_rep)[0:1]                 # [1, H] pooled edge->node features
    p2 = _dot(gout[8:16, 0:CYRp], cycle_rep)[0:1]       # [1, H] pooled cycle->node features
    wfin, sfin = wfin_r[...], sfin_r[...]
    h = _mlp([p1, p2], wfin[0:H2], sfin[0:1])
    h = _mlp([h], wfin[H2:H2 + D], sfin[1:2])
    res = _mlp([h], wfin[H2 + D:H2 + 2 * D], sfin[2:3], relu=False)   # [1, D], col 0 = output
    out_r[0] = jnp.broadcast_to(res, (8, D))


# ------------------------------------------------------------------------------------------
# ptens-style gather semantics, encoded as 0/1 matrices (host-side numpy "glue")
# ------------------------------------------------------------------------------------------
def gather0to1_matrix(src_domains, tgt_row_atom):
    R, S = len(tgt_row_atom), len(src_domains)
    A = np.zeros((R, S), np.float32)
    for r, a in enumerate(tgt_row_atom):
        for s, dom in enumerate(src_domains):
            if a in dom:
                A[r, s] = 1.0
    return A


def gather1to1_matrices(src_row_tensor, src_row_atom, src_domains,
                        tgt_row_tensor, tgt_row_atom, tgt_domains):
    Rt, Rs = len(tgt_row_atom), len(src_row_atom)
    B1 = np.zeros((Rt, Rs), np.float32)
    B2 = np.zeros((Rt, Rs), np.float32)
    for i in range(Rt):
        t, a = tgt_row_tensor[i], tgt_row_atom[i]
        for j in range(Rs):
            s, b = src_row_tensor[j], src_row_atom[j]
            if b == a:
                B1[i, j] = 1.0
            if (a in src_domains[s]) and (b in tgt_domains[t]):
                B2[i, j] = 1.0
    return B1, B2


def gather1to0_matrix(num_nodes, src_row_atom):
    C = np.zeros((num_nodes, len(src_row_atom)), np.float32)
    for j, b in enumerate(src_row_atom):
        C[b, j] = 1.0
    return C


def rowcat_scatter(n_a, n_b):
    Sa = np.zeros((n_a + n_b, n_a), np.float32)
    Sb = np.zeros((n_a + n_b, n_b), np.float32)
    Sa[np.arange(n_a), np.arange(n_a)] = 1.0
    Sb[n_a + np.arange(n_b), np.arange(n_b)] = 1.0
    return Sa, Sb


def build_structure():
    # TODO(synk): subgraph (edge / 5-cycle / 6-cycle) enumeration done on the host.
    num_nodes = 9
    edges = [(0, 1), (1, 2), (2, 3), (3, 4), (4, 5), (5, 0),
             (5, 6), (6, 7), (7, 8), (8, 4)]
    cycles5 = [[4, 5, 6, 7, 8]]
    cycles6 = [[0, 1, 2, 3, 4, 5]]

    node_domains = [frozenset([v]) for v in range(num_nodes)]
    edge_domains = [frozenset(e) for e in edges]
    c5_domains = [frozenset(c) for c in cycles5]
    c6_domains = [frozenset(c) for c in cycles6]
    cycle_domains = c5_domains + c6_domains

    edge_rt, edge_ra = [], []
    for ei, (u, v) in enumerate(edges):
        edge_rt += [ei, ei]
        edge_ra += [u, v]
    c5_rt, c5_ra = [], []
    for ci, c in enumerate(cycles5):
        for a in c:
            c5_rt.append(ci); c5_ra.append(a)
    c6_rt, c6_ra = [], []
    for ci, c in enumerate(cycles6):
        for a in c:
            c6_rt.append(ci); c6_ra.append(a)
    cy_rt = c5_rt + [t + len(cycles5) for t in c6_rt]
    cy_ra = c5_ra + c6_ra

    A_ne = gather0to1_matrix(node_domains, edge_ra)                     # [20, 9]
    A_e0 = gather0to1_matrix(edge_domains, edge_ra)                     # [20, 10]
    A_n5 = gather0to1_matrix(node_domains, c5_ra)                       # [5, 9]
    A_n6 = gather0to1_matrix(node_domains, c6_ra)                       # [6, 9]
    B1ee, B2ee = gather1to1_matrices(edge_rt, edge_ra, edge_domains,
                                     edge_rt, edge_ra, edge_domains)
    B1c5, B2c5 = gather1to1_matrices(c5_rt, c5_ra, c5_domains, c5_rt, c5_ra, c5_domains)
    B1c6, B2c6 = gather1to1_matrices(c6_rt, c6_ra, c6_domains, c6_rt, c6_ra, c6_domains)
    B1e5, B2e5 = gather1to1_matrices(edge_rt, edge_ra, edge_domains, c5_rt, c5_ra, c5_domains)
    B1e6, B2e6 = gather1to1_matrices(edge_rt, edge_ra, edge_domains, c6_rt, c6_ra, c6_domains)
    B1ce, B2ce = gather1to1_matrices(cy_rt, cy_ra, cycle_domains, edge_rt, edge_ra, edge_domains)
    S5, S6 = rowcat_scatter(len(c5_ra), len(c6_ra))                     # [11,5], [11,6]
    Ce2n = gather1to0_matrix(num_nodes, edge_ra)                        # [9, 20]
    Cc2n = gather1to0_matrix(num_nodes, cy_ra)                          # [9, 11]
    pool = np.ones((1, num_nodes), np.float32)                          # global add pool

    ER, CYR = len(edge_ra), len(cy_ra)                                  # 20, 11
    ERp, CYRp, NODEp, EDGEp = 24, 16, 16, 16                            # sublane-aligned pads

    # ---- host-side pre-composition of every chained gather / rowcat ----
    GEE = [B1ee @ B1ee, B1ee @ B2ee, B2ee @ B1ee, B2ee @ B2ee]
    CY = [S5 @ B1c5 @ B1e5 + S6 @ B1c6 @ B1e6,
          S5 @ B1c5 @ B2e5 + S6 @ B1c6 @ B2e6,
          S5 @ B2c5 @ B1e5 + S6 @ B2c6 @ B1e6,
          S5 @ B2c5 @ B2e5 + S6 @ B2c6 @ B2e6]
    EC = [B1ce @ c for c in CY] + [B2ce @ c for c in CY]
    CY0 = [S5 @ B1c5 @ A_n5 + S6 @ B1c6 @ A_n6,
           S5 @ B2c5 @ A_n5 + S6 @ B2c6 @ A_n6]
    r_e = pool @ Ce2n
    r_c = pool @ Cc2n

    GINIT = np.zeros((2 * ERp + 2 * CYRp, NODEp + EDGEp), np.float32)
    GINIT[0:ER, 0:num_nodes] = A_ne
    GINIT[ERp:ERp + ER, NODEp:NODEp + len(edges)] = A_e0
    GINIT[2 * ERp:2 * ERp + CYR, 0:num_nodes] = CY0[0]
    GINIT[2 * ERp + CYRp:2 * ERp + CYRp + CYR, 0:num_nodes] = CY0[1]

    GBIG = np.zeros((12 * ERp + 4 * CYRp, ERp), np.float32)
    for k in range(4):
        GBIG[k * ERp:k * ERp + ER, 0:ER] = GEE[k]
    o = 4 * ERp
    for k in range(4):
        GBIG[o + k * CYRp:o + k * CYRp + CYR, 0:ER] = CY[k]
    o = 4 * ERp + 4 * CYRp
    for k in range(8):
        GBIG[o + k * ERp:o + k * ERp + ER, 0:ER] = EC[k]

    GCYE = np.zeros((2 * ERp, CYRp), np.float32)
    GCYE[0:ER, 0:CYR] = B1ce
    GCYE[ERp:ERp + ER, 0:CYR] = B2ce

    GOUT = np.zeros((16, ERp), np.float32)
    GOUT[0, 0:ER] = r_e[0]
    GOUT[8, 0:CYR] = r_c[0]

    return dict(num_nodes=num_nodes, num_edges=len(edges),
                node_pad=NODEp, edge_pad=EDGEp,
                GINIT=jnp.asarray(GINIT), GBIG=jnp.asarray(GBIG),
                GCYE=jnp.asarray(GCYE), GOUT=jnp.asarray(GOUT))


# ------------------------------------------------------------------------------------------
# Deterministic parameter initialization (shapes from the module's __init__)
# ------------------------------------------------------------------------------------------
def init_linear(key, d_in, d_out, bias):
    kw, kb = jax.random.split(key)
    W = jax.random.normal(kw, (d_in, d_out), jnp.float32) / jnp.sqrt(d_in)
    b = 0.1 * jax.random.normal(kb, (d_out,), jnp.float32) if bias else None
    return W, b


def init_bn(key, dim):
    kg, kb = jax.random.split(key)
    gamma = 1.0 + 0.1 * jax.random.normal(kg, (dim,), jnp.float32)
    beta = 0.1 * jax.random.normal(kb, (dim,), jnp.float32)
    running_mean = jnp.zeros((dim,), jnp.float32)
    running_var = jnp.ones((dim,), jnp.float32)
    scale = gamma / jnp.sqrt(running_var + _BN_EPS)
    shift = beta - running_mean * scale
    return scale, shift


def init_mlp2(key, d_in, d_hid, d_out):
    k1, k2, k3, k4 = jax.random.split(key, 4)
    W1, _ = init_linear(k1, d_in, d_hid, bias=False)
    s1, sh1 = init_bn(k2, d_hid)
    W2, _ = init_linear(k3, d_hid, d_out, bias=False)
    s2, sh2 = init_bn(k4, d_out)
    return {"W1": W1, "s1": s1, "sh1": sh1, "W2": W2, "s2": s2, "sh2": sh2}


def init_conv_layer(key, H):
    k1, k2, k3, k4, k5 = jax.random.split(key, 5)
    edge2edge = {"edge_mlp": init_mlp2(k1, 5 * H, _inner_mlp_mult * H, H)}
    edge_cycle = {"edge_mlp": init_mlp2(k2, 11 * H, _inner_mlp_mult * H, H),
                  "cycle_mlp": init_mlp2(k3, 5 * H, _inner_mlp_mult * H, H)}
    Wm, _ = init_linear(k4, 2 * H, H, bias=False)
    sm, shm = init_bn(k5, H)
    return {"edge2edge": edge2edge, "edge_cycle": edge_cycle,
            "mlp_W": Wm, "mlp_s": sm, "mlp_sh": shm}


def init_model(key, E, H, D, L):
    keys = jax.random.split(key, 12 + L)
    params = {}
    params["node_embedding"] = 0.5 * jax.random.normal(keys[0], (22, E), jnp.float32)
    params["edge_embedding"] = 0.5 * jax.random.normal(keys[1], (4, E), jnp.float32)
    for name, k, din, dout in [("edge_mlp1", keys[2], 2 * E, _inner_mlp_mult * H),
                               ("edge_mlp2", keys[3], _inner_mlp_mult * H, H),
                               ("cycle_mlp1", keys[4], 2 * E, _inner_mlp_mult * H),
                               ("cycle_mlp2", keys[5], _inner_mlp_mult * H, H)]:
        W, b = init_linear(k, din, dout, bias=True)
        params[name + "_W"], params[name + "_b"] = W, b
    params["conv_layers"] = [init_conv_layer(keys[6 + i], H) for i in range(L)]
    W1, b1 = init_linear(keys[6 + L], 2 * H, D, bias=True)
    s1, sh1 = init_bn(keys[7 + L], D)
    W2, b2 = init_linear(keys[8 + L], D, D, bias=True)
    s2, sh2 = init_bn(keys[9 + L], D)
    params["f1_W"], params["f1_s"], params["f1_sh"] = W1, s1, sh1 + b1 * s1
    params["f2_W"], params["f2_s"], params["f2_sh"] = W2, s2, sh2 + b2 * s2
    Wl, bl = init_linear(keys[10 + L], D, 1, bias=True)
    params["lin_W"], params["lin_b"] = Wl, bl
    return params


# ------------------------------------------------------------------------------------------
# Host-side packing: fold BN into weights, row-stack everything into a few operands
# ------------------------------------------------------------------------------------------
def _fold_mlp2(mlp):
    return (mlp["W1"] * mlp["s1"][None, :], mlp["sh1"],
            mlp["W2"] * mlp["s2"][None, :], mlp["sh2"])


def pack_weights(params):
    H = params["edge_mlp2_W"].shape[1]
    H2 = 2 * H
    D = params["f2_W"].shape[1]

    WI1 = jnp.concatenate([params["edge_mlp1_W"], params["cycle_mlp1_W"]], 0)   # [4E, 2H]
    BI1 = (jnp.zeros((8, H2), jnp.float32)
           .at[0].set(params["edge_mlp1_b"]).at[1].set(params["cycle_mlp1_b"]))
    WI2 = jnp.concatenate([params["edge_mlp2_W"], params["cycle_mlp2_W"]], 0)   # [4H, H]
    BI2 = (jnp.zeros((8, H), jnp.float32)
           .at[0].set(params["edge_mlp2_b"]).at[1].set(params["cycle_mlp2_b"]))

    wl1, sl1, wl2, sl2 = [], [], [], []
    for layer in params["conv_layers"]:
        eW1, eS1, eW2, eS2 = _fold_mlp2(layer["edge2edge"]["edge_mlp"])
        cEW1, cES1, cEW2, cES2 = _fold_mlp2(layer["edge_cycle"]["edge_mlp"])
        cCW1, cCS1, cCW2, cCS2 = _fold_mlp2(layer["edge_cycle"]["cycle_mlp"])
        clW = layer["mlp_W"] * layer["mlp_s"][None, :]
        clS = layer["mlp_sh"]
        wl1.append(jnp.concatenate([eW1, cEW1, cCW1], 0))                       # [21H, 2H]
        sl1.append(jnp.zeros((8, H2), jnp.float32)
                   .at[0].set(eS1).at[1].set(cES1).at[2].set(cCS1))
        wl2.append(jnp.concatenate([eW2, cEW2, cCW2, clW], 0))                  # [8H, H]
        sl2.append(jnp.zeros((8, H), jnp.float32)
                   .at[0].set(eS2).at[1].set(cES2).at[2].set(cCS2).at[3].set(clS))
    WL1, SL1 = jnp.stack(wl1), jnp.stack(sl1)
    WL2, SL2 = jnp.stack(wl2), jnp.stack(sl2)

    f1W = params["f1_W"] * params["f1_s"][None, :]
    f2W = params["f2_W"] * params["f2_s"][None, :]
    linW = jnp.pad(params["lin_W"], ((0, 0), (0, D - 1)))                       # [D, D], col 0 used
    WFIN = jnp.concatenate([f1W, f2W, linW], 0)                                 # [2H + 2D, D]
    SFIN = (jnp.zeros((8, D), jnp.float32)
            .at[0].set(params["f1_sh"]).at[1].set(params["f2_sh"])
            .at[2, 0].set(params["lin_b"][0]))
    return [WI1, BI1, WI2, BI2, WL1, SL1, WL2, SL2, WFIN, SFIN]


def model_forward(params, struct, node_tokens, edge_tokens):
    # TODO(synk): embedding-table row lookup kept in XLA (trivially small gather).
    G = node_tokens.shape[0]
    nf = params["node_embedding"][node_tokens]                        # [G, num_nodes, E]
    ef = params["edge_embedding"][edge_tokens]                        # [G, num_edges, E]
    nf = jnp.pad(nf, ((0, 0), (0, struct["node_pad"] - nf.shape[1]), (0, 0)))
    ef = jnp.pad(ef, ((0, 0), (0, struct["edge_pad"] - ef.shape[1]), (0, 0)))
    feats = jnp.concatenate([nf, ef], axis=1)                         # [G, node_pad+edge_pad, E]

    inputs = [feats, struct["GINIT"], struct["GBIG"], struct["GCYE"], struct["GOUT"]]
    inputs += pack_weights(params)
    D = params["f2_W"].shape[1]

    def _const(x):
        return pl.BlockSpec(x.shape, lambda i, z=(0,) * x.ndim: z)

    in_specs = [pl.BlockSpec((1,) + feats.shape[1:], lambda i: (i, 0, 0))]
    in_specs += [_const(x) for x in inputs[1:]]

    out = pl.pallas_call(
        _edge_cycle_forward_kernel,
        out_shape=jax.ShapeDtypeStruct((G, 8, D), jnp.float32),
        grid=(G,),
        in_specs=in_specs,
        out_specs=pl.BlockSpec((1, 8, D), lambda i: (i, 0, 0)),
        compiler_params=pltpu.CompilerParams(dimension_semantics=("parallel",)),
    )(*inputs)
    return out[:, 0, 0:1]                                             # [G, 1]


if __name__ == "__main__":
    embedding_dim = 8
    hidden_dim = 16
    dense_dim = 16     # must equal hidden_dim (final_mlp uses BatchNorm1d(hidden_dim))
    num_layers = 2
    batch_graphs = 4

    struct = build_structure()
    key = jax.random.PRNGKey(0)
    kp, kn, ke = jax.random.split(key, 3)
    params = init_model(kp, embedding_dim, hidden_dim, dense_dim, num_layers)
    node_tokens = jax.random.randint(kn, (batch_graphs, struct["num_nodes"]), 0, 22)  # data.x
    edge_tokens = jax.random.randint(ke, (batch_graphs, struct["num_edges"]), 0, 4)   # data.edge_attr

    out = model_forward(params, struct, node_tokens, edge_tokens)
    out = jax.block_until_ready(out)
    assert out.shape == (batch_graphs, 1) and out.dtype == jnp.float32
    assert bool(jnp.isfinite(out).all())
    print("KERNEL_OK")
</pallas_src>

<mosaic_0001>
module attributes {stable_mosaic.version = 11 : i64} {
  func.func @_edge_cycle_forward_kernel(%arg0: i32, %arg1: memref<1x32x8xf32, #tpu.memory_space<vmem>>, %arg2: memref<80x32xf32, #tpu.memory_space<vmem>>, %arg3: memref<352x24xf32, #tpu.memory_space<vmem>>, %arg4: memref<48x16xf32, #tpu.memory_space<vmem>>, %arg5: memref<16x24xf32, #tpu.memory_space<vmem>>, %arg6: memref<32x32xf32, #tpu.memory_space<vmem>>, %arg7: memref<8x32xf32, #tpu.memory_space<vmem>>, %arg8: memref<64x16xf32, #tpu.memory_space<vmem>>, %arg9: memref<8x16xf32, #tpu.memory_space<vmem>>, %arg10: memref<2x336x32xf32, #tpu.memory_space<vmem>>, %arg11: memref<2x8x32xf32, #tpu.memory_space<vmem>>, %arg12: memref<2x128x16xf32, #tpu.memory_space<vmem>>, %arg13: memref<2x8x16xf32, #tpu.memory_space<vmem>>, %arg14: memref<64x16xf32, #tpu.memory_space<vmem>>, %arg15: memref<8x16xf32, #tpu.memory_space<vmem>>, %arg16: memref<1x8x16xf32, #tpu.memory_space<vmem>>) attributes {dimension_semantics = [#tpu.dimension_semantics<parallel>], iteration_bounds = array<i64: 4>, scalar_prefetch = 0 : i64, scratch_operands = 0 : i64, tpu.core_type = #tpu.core_type<tc>, window_params = [{transform_indices = @transform_0, window_bounds = array<i64: 1, 32, 8>}, {pipeline_mode = #tpu.pipeline_mode<synchronous>, transform_indices = @transform_1, window_bounds = array<i64: 80, 32>}, {pipeline_mode = #tpu.pipeline_mode<synchronous>, transform_indices = @transform_2, window_bounds = array<i64: 352, 24>}, {pipeline_mode = #tpu.pipeline_mode<synchronous>, transform_indices = @transform_3, window_bounds = array<i64: 48, 16>}, {pipeline_mode = #tpu.pipeline_mode<synchronous>, transform_indices = @transform_4, window_bounds = array<i64: 16, 24>}, {pipeline_mode = #tpu.pipeline_mode<synchronous>, transform_indices = @transform_5, window_bounds = array<i64: 32, 32>}, {pipeline_mode = #tpu.pipeline_mode<synchronous>, transform_indices = @transform_6, window_bounds = array<i64: 8, 32>}, {pipeline_mode = #tpu.pipeline_mode<synchronous>, transform_indices = @transform_7, window_bounds = array<i64: 64, 16>}, {pipeline_mode = #tpu.pipeline_mode<synchronous>, transform_indices = @transform_8, window_bounds = array<i64: 8, 16>}, {pipeline_mode = #tpu.pipeline_mode<synchronous>, transform_indices = @transform_9, window_bounds = array<i64: 2, 336, 32>}, {pipeline_mode = #tpu.pipeline_mode<synchronous>, transform_indices = @transform_10, window_bounds = array<i64: 2, 8, 32>}, {pipeline_mode = #tpu.pipeline_mode<synchronous>, transform_indices = @transform_11, window_bounds = array<i64: 2, 128, 16>}, {pipeline_mode = #tpu.pipeline_mode<synchronous>, transform_indices = @transform_12, window_bounds = array<i64: 2, 8, 16>}, {pipeline_mode = #tpu.pipeline_mode<synchronous>, transform_indices = @transform_13, window_bounds = array<i64: 64, 16>}, {pipeline_mode = #tpu.pipeline_mode<synchronous>, transform_indices = @transform_14, window_bounds = array<i64: 8, 16>}, {transform_indices = @transform_15, window_bounds = array<i64: 1, 8, 16>}]} {
    %c0 = arith.constant 0 : index
    %c0_0 = arith.constant 0 : index
    %c0_1 = arith.constant 0 : index
    %0 = vector.load %arg1[%c0, %c0_0, %c0_1] : memref<1x32x8xf32, #tpu.memory_space<vmem>>, vector<1x32x8xf32>
    %1 = vector.shape_cast %0 : vector<1x32x8xf32> to vector<32x8xf32>
    %c0_2 = arith.constant 0 : index
    %c0_3 = arith.constant 0 : index
    %2 = vector.load %arg2[%c0_2, %c0_3] : memref<80x32xf32, #tpu.memory_space<vmem>>, vector<80x32xf32>
    %cst = arith.constant dense<0.000000e+00> : vector<80x8xf32>
    %3 = tpu.matmul %2, %1, %cst {dimension_numbers = #tpu.dot_dimension_numbers<[1], [0], [0], [1], [0, 0, 1, 1], [], []>} : vector<80x32xf32>, vector<32x8xf32>, vector<80x8xf32> -> vector<80x8xf32>
    %c0_4 = arith.constant 0 : index
    %c0_5 = arith.constant 0 : index
    %4 = vector.load %arg6[%c0_4, %c0_5] : memref<32x32xf32, #tpu.memory_space<vmem>>, vector<32x32xf32>
    %c0_6 = arith.constant 0 : index
    %c0_7 = arith.constant 0 : index
    %5 = vector.load %arg7[%c0_6, %c0_7] : memref<8x32xf32, #tpu.memory_space<vmem>>, vector<8x32xf32>
    %c0_8 = arith.constant 0 : index
    %c0_9 = arith.constant 0 : index
    %6 = vector.load %arg8[%c0_8, %c0_9] : memref<64x16xf32, #tpu.memory_space<vmem>>, vector<64x16xf32>
    %c0_10 = arith.constant 0 : index
    %c0_11 = arith.constant 0 : index
    %7 = vector.load %arg9[%c0_10, %c0_11] : memref<8x16xf32, #tpu.memory_space<vmem>>, vector<8x16xf32>
    %8 = vector.extract_strided_slice %3 {offsets = [0, 0], sizes = [24, 8], strides = [1, 1]} : vector<80x8xf32> to vector<24x8xf32>
    %9 = vector.extract_strided_slice %3 {offsets = [24, 0], sizes = [24, 8], strides = [1, 1]} : vector<80x8xf32> to vector<24x8xf32>
    %10 = vector.extract_strided_slice %4 {offsets = [0, 0], sizes = [16, 32], strides = [1, 1]} : vector<32x32xf32> to vector<16x32xf32>
    %11 = vector.extract_strided_slice %5 {offsets = [0, 0], sizes = [1, 32], strides = [1, 1]} : vector<8x32xf32> to vector<1x32xf32>
    %12 = vector.extract_strided_slice %10 {offsets = [0, 0], sizes = [8, 32], strides = [1, 1]} : vector<16x32xf32> to vector<8x32xf32>
    %cst_12 = arith.constant dense<0.000000e+00> : vector<24x32xf32>
    %13 = tpu.matmul %8, %12, %cst_12 {dimension_numbers = #tpu.dot_dimension_numbers<[1], [0], [0], [1], [0, 0, 1, 1], [], []>} : vector<24x8xf32>, vector<8x32xf32>, vector<24x32xf32> -> vector<24x32xf32>
    %14 = vector.extract_strided_slice %10 {offsets = [8, 0], sizes = [8, 32], strides = [1, 1]} : vector<16x32xf32> to vector<8x32xf32>
    %cst_13 = arith.constant dense<0.000000e+00> : vector<24x32xf32>
    %15 = tpu.matmul %9, %14, %cst_13 {dimension_numbers = #tpu.dot_dimension_numbers<[1], [0], [0], [1], [0, 0, 1, 1], [], []>} : vector<24x8xf32>, vector<8x32xf32>, vector<24x32xf32> -> vector<24x32xf32>
    %16 = arith.addf %13, %15 : vector<24x32xf32>
    %17 = vector.broadcast %11 : vector<1x32xf32> to vector<24x32xf32>
    %18 = arith.addf %16, %17 : vector<24x32xf32>
    %cst_14 = arith.constant 0.000000e+00 : f32
    %19 = vector.broadcast %cst_14 : f32 to vector<24x32xf32>
    %20 = arith.maximumf %18, %19 : vector<24x32xf32>
    %21 = vector.extract_strided_slice %6 {offsets = [0, 0], sizes = [32, 16], strides = [1, 1]} : vector<64x16xf32> to vector<32x16xf32>
    %22 = vector.extract_strided_slice %7 {offsets = [0, 0], sizes = [1, 16], strides = [1, 1]} : vector<8x16xf32> to vector<1x16xf32>
    %cst_15 = arith.constant dense<0.000000e+00> : vector<24x16xf32>
    %23 = tpu.matmul %20, %21, %cst_15 {dimension_numbers = #tpu.dot_dimension_numbers<[1], [0], [0], [1], [0, 0, 1, 1], [], []>} : vector<24x32xf32>, vector<32x16xf32>, vector<24x16xf32> -> vector<24x16xf32>
    %24 = vector.broadcast %22 : vector<1x16xf32> to vector<24x16xf32>
    %25 = arith.addf %23, %24 : vector<24x16xf32>
    %cst_16 = arith.constant 0.000000e+00 : f32
    %26 = vector.broadcast %cst_16 : f32 to vector<24x16xf32>
    %27 = arith.maximumf %25, %26 : vector<24x16xf32>
    %28 = vector.extract_strided_slice %3 {offsets = [48, 0], sizes = [16, 8], strides = [1, 1]} : vector<80x8xf32> to vector<16x8xf32>
    %29 = vector.extract_strided_slice %3 {offsets = [64, 0], sizes = [16, 8], strides = [1, 1]} : vector<80x8xf32> to vector<16x8xf32>
    %30 = vector.extract_strided_slice %4 {offsets = [16, 0], sizes = [16, 32], strides = [1, 1]} : vector<32x32xf32> to vector<16x32xf32>
    %31 = vector.extract_strided_slice %5 {offsets = [1, 0], sizes = [1, 32], strides = [1, 1]} : vector<8x32xf32> to vector<1x32xf32>
    %32 = vector.extract_strided_slice %30 {offsets = [0, 0], sizes = [8, 32], strides = [1, 1]} : vector<16x32xf32> to vector<8x32xf32>
    %cst_17 = arith.constant dense<0.000000e+00> : vector<16x32xf32>
    %33 = tpu.matmul %28, %32, %cst_17 {dimension_numbers = #tpu.dot_dimension_numbers<[1], [0], [0], [1], [0, 0, 1, 1], [], []>} : vector<16x8xf32>, vector<8x32xf32>, vector<16x32xf32> -> vector<16x32xf32>
    %34 = vector.extract_strided_slice %30 {offsets = [8, 0], sizes = [8, 32], strides = [1, 1]} : vector<16x32xf32> to vector<8x32xf32>
    %cst_18 = arith.constant dense<0.000000e+00> : vector<16x32xf32>
    %35 = tpu.matmul %29, %34, %cst_18 {dimension_numbers = #tpu.dot_dimension_numbers<[1], [0], [0], [1], [0, 0, 1, 1], [], []>} : vector<16x8xf32>, vector<8x32xf32>, vector<16x32xf32> -> vector<16x32xf32>
    %36 = arith.addf %33, %35 : vector<16x32xf32>
    %37 = vector.broadcast %31 : vector<1x32xf32> to vector<16x32xf32>
    %38 = arith.addf %36, %37 : vector<16x32xf32>
    %cst_19 = arith.constant 0.000000e+00 : f32
    %39 = vector.broadcast %cst_19 : f32 to vector<16x32xf32>
    %40 = arith.maximumf %38, %39 : vector<16x32xf32>
    %41 = vector.extract_strided_slice %6 {offsets = [32, 0], sizes = [32, 16], strides = [1, 1]} : vector<64x16xf32> to vector<32x16xf32>
    %42 = vector.extract_strided_slice %7 {offsets = [1, 0], sizes = [1, 16], strides = [1, 1]} : vector<8x16xf32> to vector<1x16xf32>
    %cst_20 = arith.constant dense<0.000000e+00> : vector<16x16xf32>
    %43 = tpu.matmul %40, %41, %cst_20 {dimension_numbers = #tpu.dot_dimension_numbers<[1], [0], [0], [1], [0, 0, 1, 1], [], []>} : vector<16x32xf32>, vector<32x16xf32>, vector<16x16xf32> -> vector<16x16xf32>
    %44 = vector.broadcast %42 : vector<1x16xf32> to vector<16x16xf32>
    %45 = arith.addf %43, %44 : vector<16x16xf32>
    %cst_21 = arith.constant 0.000000e+00 : f32
    %46 = vector.broadcast %cst_21 : f32 to vector<16x16xf32>
    %47 = arith.maximumf %45, %46 : vector<16x16xf32>
    %c0_22 = arith.constant 0 : index
    %c0_23 = arith.constant 0 : index
    %48 = vector.load %arg3[%c0_22, %c0_23] : memref<352x24xf32, #tpu.memory_space<vmem>>, vector<352x24xf32>
    %c0_24 = arith.constant 0 : index
    %c0_25 = arith.constant 0 : index
    %49 = vector.load %arg4[%c0_24, %c0_25] : memref<48x16xf32, #tpu.memory_space<vmem>>, vector<48x16xf32>
    %c0_i32 = arith.constant 0 : i32
    %c2_i32 = arith.constant 2 : i32
    %50 = arith.addi %c0_i32, %c2_i32 : i32
    %c1_i32 = arith.constant 1 : i32
    %51:2 = scf.for %arg17 = %c0_i32 to %50 step %c1_i32 iter_args(%arg18 = %27, %arg19 = %47) -> (vector<24x16xf32>, vector<16x16xf32>)  : i32 {
      %86 = arith.index_cast %arg17 : i32 to index
      %c0_44 = arith.constant 0 : index
      %c0_45 = arith.constant 0 : index
      %87 = vector.load %arg10[%86, %c0_44, %c0_45] : memref<2x336x32xf32, #tpu.memory_space<vmem>>, vector<1x336x32xf32>
      %88 = vector.shape_cast %87 : vector<1x336x32xf32> to vector<336x32xf32>
      %89 = arith.index_cast %arg17 : i32 to index
      %c0_46 = arith.constant 0 : index
      %c0_47 = arith.constant 0 : index
      %90 = vector.load %arg11[%89, %c0_46, %c0_47] : memref<2x8x32xf32, #tpu.memory_space<vmem>>, vector<1x8x32xf32>
      %91 = vector.shape_cast %90 : vector<1x8x32xf32> to vector<8x32xf32>
      %92 = arith.index_cast %arg17 : i32 to index
      %c0_48 = arith.constant 0 : index
      %c0_49 = arith.constant 0 : index
      %93 = vector.load %arg12[%92, %c0_48, %c0_49] : memref<2x128x16xf32, #tpu.memory_space<vmem>>, vector<1x128x16xf32>
      %94 = vector.shape_cast %93 : vector<1x128x16xf32> to vector<128x16xf32>
      %95 = arith.index_cast %arg17 : i32 to index
      %c0_50 = arith.constant 0 : index
      %c0_51 = arith.constant 0 : index
      %96 = vector.load %arg13[%95, %c0_50, %c0_51] : memref<2x8x16xf32, #tpu.memory_space<vmem>>, vector<1x8x16xf32>
      %97 = vector.shape_cast %96 : vector<1x8x16xf32> to vector<8x16xf32>
      %cst_52 = arith.constant dense<0.000000e+00> : vector<352x16xf32>
      %98 = tpu.matmul %48, %arg18, %cst_52 {dimension_numbers = #tpu.dot_dimension_numbers<[1], [0], [0], [1], [0, 0, 1, 1], [], []>} : vector<352x24xf32>, vector<24x16xf32>, vector<352x16xf32> -> vector<352x16xf32>
      %cst_53 = arith.constant dense<0.000000e+00> : vector<48x16xf32>
      %99 = tpu.matmul %49, %arg19, %cst_53 {dimension_numbers = #tpu.dot_dimension_numbers<[1], [0], [0], [1], [0, 0, 1, 1], [], []>} : vector<48x16xf32>, vector<16x16xf32>, vector<48x16xf32> -> vector<48x16xf32>
      %100 = vector.extract_strided_slice %98 {offsets = [0, 0], sizes = [24, 16], strides = [1, 1]} : vector<352x16xf32> to vector<24x16xf32>
      %101 = vector.extract_strided_slice %98 {offsets = [24, 0], sizes = [24, 16], strides = [1, 1]} : vector<352x16xf32> to vector<24x16xf32>
      %102 = vector.extract_strided_slice %98 {offsets = [48, 0], sizes = [24, 16], strides = [1, 1]} : vector<352x16xf32> to vector<24x16xf32>
      %103 = vector.extract_strided_slice %98 {offsets = [72, 0], sizes = [24, 16], strides = [1, 1]} : vector<352x16xf32> to vector<24x16xf32>
      %104 = vector.extract_strided_slice %98 {offsets = [96, 0], sizes = [16, 16], strides = [1, 1]} : vector<352x16xf32> to vector<16x16xf32>
      %105 = vector.extract_strided_slice %98 {offsets = [112, 0], sizes = [16, 16], strides = [1, 1]} : vector<352x16xf32> to vector<16x16xf32>
      %106 = vector.extract_strided_slice %98 {offsets = [128, 0], sizes = [16, 16], strides = [1, 1]} : vector<352x16xf32> to vector<16x16xf32>
      %107 = vector.extract_strided_slice %98 {offsets = [144, 0], sizes = [16, 16], strides = [1, 1]} : vector<352x16xf32> to vector<16x16xf32>
      %108 = vector.extract_strided_slice %98 {offsets = [160, 0], sizes = [24, 16], strides = [1, 1]} : vector<352x16xf32> to vector<24x16xf32>
      %109 = vector.extract_strided_slice %98 {offsets = [184, 0], sizes = [24, 16], strides = [1, 1]} : vector<352x16xf32> to vector<24x16xf32>
      %110 = vector.extract_strided_slice %98 {offsets = [208, 0], sizes = [24, 16], strides = [1, 1]} : vector<352x16xf32> to vector<24x16xf32>
      %111 = vector.extract_strided_slice %98 {offsets = [232, 0], sizes = [24, 16], strides = [1, 1]} : vector<352x16xf32> to vector<24x16xf32>
      %112 = vector.extract_strided_slice %98 {offsets = [256, 0], sizes = [24, 16], strides = [1, 1]} : vector<352x16xf32> to vector<24x16xf32>
      %113 = vector.extract_strided_slice %98 {offsets = [280, 0], sizes = [24, 16], strides = [1, 1]} : vector<352x16xf32> to vector<24x16xf32>
      %114 = vector.extract_strided_slice %98 {offsets = [304, 0], sizes = [24, 16], strides = [1, 1]} : vector<352x16xf32> to vector<24x16xf32>
      %115 = vector.extract_strided_slice %98 {offsets = [328, 0], sizes = [24, 16], strides = [1, 1]} : vector<352x16xf32> to vector<24x16xf32>
      %116 = vector.extract_strided_slice %88 {offsets = [0, 0], sizes = [80, 32], strides = [1, 1]} : vector<336x32xf32> to vector<80x32xf32>
      %117 = vector.extract_strided_slice %91 {offsets = [0, 0], sizes = [1, 32], strides = [1, 1]} : vector<8x32xf32> to vector<1x32xf32>
      %118 = vector.extract_strided_slice %116 {offsets = [0, 0], sizes = [16, 32], strides = [1, 1]} : vector<80x32xf32> to vector<16x32xf32>
      %cst_54 = arith.constant dense<0.000000e+00> : vector<24x32xf32>
      %119 = tpu.matmul %arg18, %118, %cst_54 {dimension_numbers = #tpu.dot_dimension_numbers<[1], [0], [0], [1], [0, 0, 1, 1], [], []>} : vector<24x16xf32>, vector<16x32xf32>, vector<24x32xf32> -> vector<24x32xf32>
      %120 = vector.extract_strided_slice %116 {offsets = [16, 0], sizes = [16, 32], strides = [1, 1]} : vector<80x32xf32> to vector<16x32xf32>
      %cst_55 = arith.constant dense<0.000000e+00> : vector<24x32xf32>
      %121 = tpu.matmul %100, %120, %cst_55 {dimension_numbers = #tpu.dot_dimension_numbers<[1], [0], [0], [1], [0, 0, 1, 1], [], []>} : vector<24x16xf32>, vector<16x32xf32>, vector<24x32xf32> -> vector<24x32xf32>
      %122 = arith.addf %119, %121 : vector<24x32xf32>
      %123 = vector.extract_strided_slice %116 {offsets = [32, 0], sizes = [16, 32], strides = [1, 1]} : vector<80x32xf32> to vector<16x32xf32>
      %cst_56 = arith.constant dense<0.000000e+00> : vector<24x32xf32>
      %124 = tpu.matmul %101, %123, %cst_56 {dimension_numbers = #tpu.dot_dimension_numbers<[1], [0], [0], [1], [0, 0, 1, 1], [], []>} : vector<24x16xf32>, vector<16x32xf32>, vector<24x32xf32> -> vector<24x32xf32>
      %125 = arith.addf %122, %124 : vector<24x32xf32>
      %126 = vector.extract_strided_slice %116 {offsets = [48, 0], sizes = [16, 32], strides = [1, 1]} : vector<80x32xf32> to vector<16x32xf32>
      %cst_57 = arith.constant dense<0.000000e+00> : vector<24x32xf32>
      %127 = tpu.matmul %102, %126, %cst_57 {dimension_numbers = #tpu.dot_dimension_numbers<[1], [0], [0], [1], [0, 0, 1, 1], [], []>} : vector<24x16xf32>, vector<16x32xf32>, vector<24x32xf32> -> vector<24x32xf32>
      %128 = arith.addf %125, %127 : vector<24x32xf32>
      %129 = vector.extract_strided_slice %116 {offsets = [64, 0], sizes = [16, 32], strides = [1, 1]} : vector<80x32xf32> to vector<16x32xf32>
      %cst_58 = arith.constant dense<0.000000e+00> : vector<24x32xf32>
      %130 = tpu.matmul %103, %129, %cst_58 {dimension_numbers = #tpu.dot_dimension_numbers<[1], [0], [0], [1], [0, 0, 1, 1], [], []>} : vector<24x16xf32>, vector<16x32xf32>, vector<24x32xf32> -> vector<24x32xf32>
      %131 = arith.addf %128, %130 : vector<24x32xf32>
      %132 = vector.broadcast %117 : vector<1x32xf32> to vector<24x32xf32>
      %133 = arith.addf %131, %132 : vector<24x32xf32>
      %cst_59 = arith.constant 0.000000e+00 : f32
      %134 = vector.broadcast %cst_59 : f32 to vector<24x32xf32>
      %135 = arith.maximumf %133, %134 : vector<24x32xf32>
      %136 = vector.extract_strided_slice %94 {offsets = [0, 0], sizes = [32, 16], strides = [1, 1]} : vector<128x16xf32> to vector<32x16xf32>
      %137 = vector.extract_strided_slice %97 {offsets = [0, 0], sizes = [1, 16], strides = [1, 1]} : vector<8x16xf32> to vector<1x16xf32>
      %cst_60 = arith.constant dense<0.000000e+00> : vector<24x16xf32>
      %138 = tpu.matmul %135, %136, %cst_60 {dimension_numbers = #tpu.dot_dimension_numbers<[1], [0], [0], [1], [0, 0, 1, 1], [], []>} : vector<24x32xf32>, vector<32x16xf32>, vector<24x16xf32> -> vector<24x16xf32>
      %139 = vector.broadcast %137 : vector<1x16xf32> to vector<24x16xf32>
      %140 = arith.addf %138, %139 : vector<24x16xf32>
      %cst_61 = arith.constant 0.000000e+00 : f32
      %141 = vector.broadcast %cst_61 : f32 to vector<24x16xf32>
      %142 = arith.maximumf %140, %141 : vector<24x16xf32>
      %143 = vector.extract_strided_slice %99 {offsets = [0, 0], sizes = [24, 16], strides = [1, 1]} : vector<48x16xf32> to vector<24x16xf32>
      %144 = vector.extract_strided_slice %99 {offsets = [24, 0], sizes = [24, 16], strides = [1, 1]} : vector<48x16xf32> to vector<24x16xf32>
      %145 = vector.extract_strided_slice %88 {offsets = [80, 0], sizes = [176, 32], strides = [1, 1]} : vector<336x32xf32> to vector<176x32xf32>
      %146 = vector.extract_strided_slice %91 {offsets = [1, 0], sizes = [1, 32], strides = [1, 1]} : vector<8x32xf32> to vector<1x32xf32>
      %147 = vector.extract_strided_slice %145 {offsets = [0, 0], sizes = [16, 32], strides = [1, 1]} : vector<176x32xf32> to vector<16x32xf32>
      %cst_62 = arith.constant dense<0.000000e+00> : vector<24x32xf32>
      %148 = tpu.matmul %arg18, %147, %cst_62 {dimension_numbers = #tpu.dot_dimension_numbers<[1], [0], [0], [1], [0, 0, 1, 1], [], []>} : vector<24x16xf32>, vector<16x32xf32>, vector<24x32xf32> -> vector<24x32xf32>
      %149 = vector.extract_strided_slice %145 {offsets = [16, 0], sizes = [16, 32], strides = [1, 1]} : vector<176x32xf32> to vector<16x32xf32>
      %cst_63 = arith.constant dense<0.000000e+00> : vector<24x32xf32>
      %150 = tpu.matmul %108, %149, %cst_63 {dimension_numbers = #tpu.dot_dimension_numbers<[1], [0], [0], [1], [0, 0, 1, 1], [], []>} : vector<24x16xf32>, vector<16x32xf32>, vector<24x32xf32> -> vector<24x32xf32>
      %151 = arith.addf %148, %150 : vector<24x32xf32>
      %152 = vector.extract_strided_slice %145 {offsets = [32, 0], sizes = [16, 32], strides = [1, 1]} : vector<176x32xf32> to vector<16x32xf32>
      %cst_64 = arith.constant dense<0.000000e+00> : vector<24x32xf32>
      %153 = tpu.matmul %109, %152, %cst_64 {dimension_numbers = #tpu.dot_dimension_numbers<[1], [0], [0], [1], [0, 0, 1, 1], [], []>} : vector<24x16xf32>, vector<16x32xf32>, vector<24x32xf32> -> vector<24x32xf32>
      %154 = arith.addf %151, %153 : vector<24x32xf32>
      %155 = vector.extract_strided_slice %145 {offsets = [48, 0], sizes = [16, 32], strides = [1, 1]} : vector<176x32xf32> to vector<16x32xf32>
      %cst_65 = arith.constant dense<0.000000e+00> : vector<24x32xf32>
      %156 = tpu.matmul %110, %155, %cst_65 {dimension_numbers = #tpu.dot_dimension_numbers<[1], [0], [0], [1], [0, 0, 1, 1], [], []>} : vector<24x16xf32>, vector<16x32xf32>, vector<24x32xf32> -> vector<24x32xf32>
      %157 = arith.addf %154, %156 : vector<24x32xf32>
      %158 = vector.extract_strided_slice %145 {offsets = [64, 0], sizes = [16, 32], strides = [1, 1]} : vector<176x32xf32> to vector<16x32xf32>
      %cst_66 = arith.constant dense<0.000000e+00> : vector<24x32xf32>
      %159 = tpu.matmul %111, %158, %cst_66 {dimension_numbers = #tpu.dot_dimension_numbers<[1], [0], [0], [1], [0, 0, 1, 1], [], []>} : vector<24x16xf32>, vector<16x32xf32>, vector<24x32xf32> -> vector<24x32xf32>
      %160 = arith.addf %157, %159 : vector<24x32xf32>
      %161 = vector.extract_strided_slice %145 {offsets = [80, 0], sizes = [16, 32], strides = [1, 1]} : vector<176x32xf32> to vector<16x32xf32>
      %cst_67 = arith.constant dense<0.000000e+00> : vector<24x32xf32>
      %162 = tpu.matmul %143, %161, %cst_67 {dimension_numbers = #tpu.dot_dimension_numbers<[1], [0], [0], [1], [0, 0, 1, 1], [], []>} : vector<24x16xf32>, vector<16x32xf32>, vector<24x32xf32> -> vector<24x32xf32>
      %163 = arith.addf %160, %162 : vector<24x32xf32>
      %164 = vector.extract_strided_slice %145 {offsets = [96, 0], sizes = [16, 32], strides = [1, 1]} : vector<176x32xf32> to vector<16x32xf32>
      %cst_68 = arith.constant dense<0.000000e+00> : vector<24x32xf32>
      %165 = tpu.matmul %112, %164, %cst_68 {dimension_numbers = #tpu.dot_dimension_numbers<[1], [0], [0], [1], [0, 0, 1, 1], [], []>} : vector<24x16xf32>, vector<16x32xf32>, vector<24x32xf32> -> vector<24x32xf32>
      %166 = arith.addf %163, %165 : vector<24x32xf32>
      %167 = vector.extract_strided_slice %145 {offsets = [112, 0], sizes = [16, 32], strides = [1, 1]} : vector<176x32xf32> to vector<16x32xf32>
      %cst_69 = arith.constant dense<0.000000e+00> : vector<24x32xf32>
      %168 = tpu.matmul %113, %167, %cst_69 {dimension_numbers = #tpu.dot_dimension_numbers<[1], [0], [0], [1], [0, 0, 1, 1], [], []>} : vector<24x16xf32>, vector<16x32xf32>, vector<24x32xf32> -> vector<24x32xf32>
      %169 = arith.addf %166, %168 : vector<24x32xf32>
      %170 = vector.extract_strided_slice %145 {offsets = [128, 0], sizes = [16, 32], strides = [1, 1]} : vector<176x32xf32> to vector<16x32xf32>
      %cst_70 = arith.constant dense<0.000000e+00> : vector<24x32xf32>
      %171 = tpu.matmul %114, %170, %cst_70 {dimension_numbers = #tpu.dot_dimension_numbers<[1], [0], [0], [1], [0, 0, 1, 1], [], []>} : vector<24x16xf32>, vector<16x32xf32>, vector<24x32xf32> -> vector<24x32xf32>
      %172 = arith.addf %169, %171 : vector<24x32xf32>
      %173 = vector.extract_strided_slice %145 {offsets = [144, 0], sizes = [16, 32], strides = [1, 1]} : vector<176x32xf32> to vector<16x32xf32>
      %cst_71 = arith.constant dense<0.000000e+00> : vector<24x32xf32>
      %174 = tpu.matmul %115, %173, %cst_71 {dimension_numbers = #tpu.dot_dimension_numbers<[1], [0], [0], [1], [0, 0, 1, 1], [], []>} : vector<24x16xf32>, vector<16x32xf32>, vector<24x32xf32> -> vector<24x32xf32>
      %175 = arith.addf %172, %174 : vector<24x32xf32>
      %176 = vector.extract_strided_slice %145 {offsets = [160, 0], sizes = [16, 32], strides = [1, 1]} : vector<176x32xf32> to vector<16x32xf32>
      %cst_72 = arith.constant dense<0.000000e+00> : vector<24x32xf32>
      %177 = tpu.matmul %144, %176, %cst_72 {dimension_numbers = #tpu.dot_dimension_numbers<[1], [0], [0], [1], [0, 0, 1, 1], [], []>} : vector<24x16xf32>, vector<16x32xf32>, vector<24x32xf32> -> vector<24x32xf32>
      %178 = arith.addf %175, %177 : vector<24x32xf32>
      %179 = vector.broadcast %146 : vector<1x32xf32> to vector<24x32xf32>
      %180 = arith.addf %178, %179 : vector<24x32xf32>
      %cst_73 = arith.constant 0.000000e+00 : f32
      %181 = vector.broadcast %cst_73 : f32 to vector<24x32xf32>
      %182 = arith.maximumf %180, %181 : vector<24x32xf32>
      %183 = vector.extract_strided_slice %94 {offsets = [32, 0], sizes = [32, 16], strides = [1, 1]} : vector<128x16xf32> to vector<32x16xf32>
      %184 = vector.extract_strided_slice %97 {offsets = [1, 0], sizes = [1, 16], strides = [1, 1]} : vector<8x16xf32> to vector<1x16xf32>
      %cst_74 = arith.constant dense<0.000000e+00> : vector<24x16xf32>
      %185 = tpu.matmul %182, %183, %cst_74 {dimension_numbers = #tpu.dot_dimension_numbers<[1], [0], [0], [1], [0, 0, 1, 1], [], []>} : vector<24x32xf32>, vector<32x16xf32>, vector<24x16xf32> -> vector<24x16xf32>
      %186 = vector.broadcast %184 : vector<1x16xf32> to vector<24x16xf32>
      %187 = arith.addf %185, %186 : vector<24x16xf32>
      %cst_75 = arith.constant 0.000000e+00 : f32
      %188 = vector.broadcast %cst_75 : f32 to vector<24x16xf32>
      %189 = arith.maximumf %187, %188 : vector<24x16xf32>
      %190 = vector.extract_strided_slice %88 {offsets = [256, 0], sizes = [80, 32], strides = [1, 1]} : vector<336x32xf32> to vector<80x32xf32>
      %191 = vector.extract_strided_slice %91 {offsets = [2, 0], sizes = [1, 32], strides = [1, 1]} : vector<8x32xf32> to vector<1x32xf32>
      %192 = vector.extract_strided_slice %190 {offsets = [0, 0], sizes = [16, 32], strides = [1, 1]} : vector<80x32xf32> to vector<16x32xf32>
      %cst_76 = arith.constant dense<0.000000e+00> : vector<16x32xf32>
      %193 = tpu.matmul %104, %192, %cst_76 {dimension_numbers = #tpu.dot_dimension_numbers<[1], [0], [0], [1], [0, 0, 1, 1], [], []>} : vector<16x16xf32>, vector<16x32xf32>, vector<16x32xf32> -> vector<16x32xf32>
      %194 = vector.extract_strided_slice %190 {offsets = [16, 0], sizes = [16, 32], strides = [1, 1]} : vector<80x32xf32> to vector<16x32xf32>
      %cst_77 = arith.constant dense<0.000000e+00> : vector<16x32xf32>
      %195 = tpu.matmul %105, %194, %cst_77 {dimension_numbers = #tpu.dot_dimension_numbers<[1], [0], [0], [1], [0, 0, 1, 1], [], []>} : vector<16x16xf32>, vector<16x32xf32>, vector<16x32xf32> -> vector<16x32xf32>
      %196 = arith.addf %193, %195 : vector<16x32xf32>
      %197 = vector.extract_strided_slice %190 {offsets = [32, 0], sizes = [16, 32], strides = [1, 1]} : vector<80x32xf32> to vector<16x32xf32>
      %cst_78 = arith.constant dense<0.000000e+00> : vector<16x32xf32>
      %198 = tpu.matmul %106, %197, %cst_78 {dimension_numbers = #tpu.dot_dimension_numbers<[1], [0], [0], [1], [0, 0, 1, 1], [], []>} : vector<16x16xf32>, vector<16x32xf32>, vector<16x32xf32> -> vector<16x32xf32>
      %199 = arith.addf %196, %198 : vector<16x32xf32>
      %200 = vector.extract_strided_slice %190 {offsets = [48, 0], sizes = [16, 32], strides = [1, 1]} : vector<80x32xf32> to vector<16x32xf32>
      %cst_79 = arith.constant dense<0.000000e+00> : vector<16x32xf32>
      %201 = tpu.matmul %107, %200, %cst_79 {dimension_numbers = #tpu.dot_dimension_numbers<[1], [0], [0], [1], [0, 0, 1, 1], [], []>} : vector<16x16xf32>, vector<16x32xf32>, vector<16x32xf32> -> vector<16x32xf32>
      %202 = arith.addf %199, %201 : vector<16x32xf32>
      %203 = vector.extract_strided_slice %190 {offsets = [64, 0], sizes = [16, 32], strides = [1, 1]} : vector<80x32xf32> to vector<16x32xf32>
      %cst_80 = arith.constant dense<0.000000e+00> : vector<16x32xf32>
      %204 = tpu.matmul %arg19, %203, %cst_80 {dimension_numbers = #tpu.dot_dimension_numbers<[1], [0], [0], [1], [0, 0, 1, 1], [], []>} : vector<16x16xf32>, vector<16x32xf32>, vector<16x32xf32> -> vector<16x32xf32>
      %205 = arith.addf %202, %204 : vector<16x32xf32>
      %206 = vector.broadcast %191 : vector<1x32xf32> to vector<16x32xf32>
      %207 = arith.addf %205, %206 : vector<16x32xf32>
      %cst_81 = arith.constant 0.000000e+00 : f32
      %208 = vector.broadcast %cst_81 : f32 to vector<16x32xf32>
      %209 = arith.maximumf %207, %208 : vector<16x32xf32>
      %210 = vector.extract_strided_slice %94 {offsets = [64, 0], sizes = [32, 16], strides = [1, 1]} : vector<128x16xf32> to vector<32x16xf32>
      %211 = vector.extract_strided_slice %97 {offsets = [2, 0], sizes = [1, 16], strides = [1, 1]} : vector<8x16xf32> to vector<1x16xf32>
      %cst_82 = arith.constant dense<0.000000e+00> : vector<16x16xf32>
      %212 = tpu.matmul %209, %210, %cst_82 {dimension_numbers = #tpu.dot_dimension_numbers<[1], [0], [0], [1], [0, 0, 1, 1], [], []>} : vector<16x32xf32>, vector<32x16xf32>, vector<16x16xf32> -> vector<16x16xf32>
      %213 = vector.broadcast %211 : vector<1x16xf32> to vector<16x16xf32>
      %214 = arith.addf %212, %213 : vector<16x16xf32>
      %cst_83 = arith.constant 0.000000e+00 : f32
      %215 = vector.broadcast %cst_83 : f32 to vector<16x16xf32>
      %216 = arith.maximumf %214, %215 : vector<16x16xf32>
      %217 = vector.extract_strided_slice %94 {offsets = [96, 0], sizes = [32, 16], strides = [1, 1]} : vector<128x16xf32> to vector<32x16xf32>
      %218 = vector.extract_strided_slice %97 {offsets = [3, 0], sizes = [1, 16], strides = [1, 1]} : vector<8x16xf32> to vector<1x16xf32>
      %219 = vector.extract_strided_slice %217 {offsets = [0, 0], sizes = [16, 16], strides = [1, 1]} : vector<32x16xf32> to vector<16x16xf32>
      %cst_84 = arith.constant dense<0.000000e+00> : vector<24x16xf32>
      %220 = tpu.matmul %142, %219, %cst_84 {dimension_numbers = #tpu.dot_dimension_numbers<[1], [0], [0], [1], [0, 0, 1, 1], [], []>} : vector<24x16xf32>, vector<16x16xf32>, vector<24x16xf32> -> vector<24x16xf32>
      %221 = vector.extract_strided_slice %217 {offsets = [16, 0], sizes = [16, 16], strides = [1, 1]} : vector<32x16xf32> to vector<16x16xf32>
      %cst_85 = arith.constant dense<0.000000e+00> : vector<24x16xf32>
      %222 = tpu.matmul %189, %221, %cst_85 {dimension_numbers = #tpu.dot_dimension_numbers<[1], [0], [0], [1], [0, 0, 1, 1], [], []>} : vector<24x16xf32>, vector<16x16xf32>, vector<24x16xf32> -> vector<24x16xf32>
      %223 = arith.addf %220, %222 : vector<24x16xf32>
      %224 = vector.broadcast %218 : vector<1x16xf32> to vector<24x16xf32>
      %225 = arith.addf %223, %224 : vector<24x16xf32>
      %cst_86 = arith.constant 0.000000e+00 : f32
      %226 = vector.broadcast %cst_86 : f32 to vector<24x16xf32>
      %227 = arith.maximumf %225, %226 : vector<24x16xf32>
      scf.yield %227, %216 : vector<24x16xf32>, vector<16x16xf32>
    }
    %c2_i32_26 = arith.constant 2 : i32
    %c0_27 = arith.constant 0 : index
    %c0_28 = arith.constant 0 : index
    %52 = vector.load %arg5[%c0_27, %c0_28] : memref<16x24xf32, #tpu.memory_space<vmem>>, vector<16x24xf32>
    %53 = vector.extract_strided_slice %52 {offsets = [0, 0], sizes = [8, 24], strides = [1, 1]} : vector<16x24xf32> to vector<8x24xf32>
    %cst_29 = arith.constant dense<0.000000e+00> : vector<8x16xf32>
    %54 = tpu.matmul %53, %51#0, %cst_29 {dimension_numbers = #tpu.dot_dimension_numbers<[1], [0], [0], [1], [0, 0, 1, 1], [], []>} : vector<8x24xf32>, vector<24x16xf32>, vector<8x16xf32> -> vector<8x16xf32>
    %55 = vector.extract_strided_slice %54 {offsets = [0, 0], sizes = [1, 16], strides = [1, 1]} : vector<8x16xf32> to vector<1x16xf32>
    %56 = vector.extract_strided_slice %52 {offsets = [8, 0], sizes = [8, 16], strides = [1, 1]} : vector<16x24xf32> to vector<8x16xf32>
    %cst_30 = arith.constant dense<0.000000e+00> : vector<8x16xf32>
    %57 = tpu.matmul %56, %51#1, %cst_30 {dimension_numbers = #tpu.dot_dimension_numbers<[1], [0], [0], [1], [0, 0, 1, 1], [], []>} : vector<8x16xf32>, vector<16x16xf32>, vector<8x16xf32> -> vector<8x16xf32>
    %58 = vector.extract_strided_slice %57 {offsets = [0, 0], sizes = [1, 16], strides = [1, 1]} : vector<8x16xf32> to vector<1x16xf32>
    %c0_31 = arith.constant 0 : index
    %c0_32 = arith.constant 0 : index
    %59 = vector.load %arg14[%c0_31, %c0_32] : memref<64x16xf32, #tpu.memory_space<vmem>>, vector<64x16xf32>
    %c0_33 = arith.constant 0 : index
    %c0_34 = arith.constant 0 : index
    %60 = vector.load %arg15[%c0_33, %c0_34] : memref<8x16xf32, #tpu.memory_space<vmem>>, vector<8x16xf32>
    %61 = vector.extract_strided_slice %59 {offsets = [0, 0], sizes = [32, 16], strides = [1, 1]} : vector<64x16xf32> to vector<32x16xf32>
    %62 = vector.extract_strided_slice %60 {offsets = [0, 0], sizes = [1, 16], strides = [1, 1]} : vector<8x16xf32> to vector<1x16xf32>
    %63 = vector.extract_strided_slice %61 {offsets = [0, 0], sizes = [16, 16], strides = [1, 1]} : vector<32x16xf32> to vector<16x16xf32>
    %cst_35 = arith.constant dense<0.000000e+00> : vector<1x16xf32>
    %64 = tpu.matmul %55, %63, %cst_35 {dimension_numbers = #tpu.dot_dimension_numbers<[1], [0], [0], [1], [0, 0, 1, 1], [], []>} : vector<1x16xf32>, vector<16x16xf32>, vector<1x16xf32> -> vector<1x16xf32>
    %65 = vector.extract_strided_slice %61 {offsets = [16, 0], sizes = [16, 16], strides = [1, 1]} : vector<32x16xf32> to vector<16x16xf32>
    %cst_36 = arith.constant dense<0.000000e+00> : vector<1x16xf32>
    %66 = tpu.matmul %58, %65, %cst_36 {dimension_numbers = #tpu.dot_dimension_numbers<[1], [0], [0], [1], [0, 0, 1, 1], [], []>} : vector<1x16xf32>, vector<16x16xf32>, vector<1x16xf32> -> vector<1x16xf32>
    %67 = arith.addf %64, %66 : vector<1x16xf32>
    %68 = arith.addf %67, %62 : vector<1x16xf32>
    %cst_37 = arith.constant 0.000000e+00 : f32
    %69 = vector.broadcast %cst_37 : f32 to vector<1x16xf32>
    %70 = arith.maximumf %68, %69 : vector<1x16xf32>
    %71 = vector.extract_strided_slice %59 {offsets = [32, 0], sizes = [16, 16], strides = [1, 1]} : vector<64x16xf32> to vector<16x16xf32>
    %72 = vector.extract_strided_slice %60 {offsets = [1, 0], sizes = [1, 16], strides = [1, 1]} : vector<8x16xf32> to vector<1x16xf32>
    %cst_38 = arith.constant dense<0.000000e+00> : vector<1x16xf32>
    %73 = tpu.matmul %70, %71, %cst_38 {dimension_numbers = #tpu.dot_dimension_numbers<[1], [0], [0], [1], [0, 0, 1, 1], [], []>} : vector<1x16xf32>, vector<16x16xf32>, vector<1x16xf32> -> vector<1x16xf32>
    %74 = arith.addf %73, %72 : vector<1x16xf32>
    %cst_39 = arith.constant 0.000000e+00 : f32
    %75 = vector.broadcast %cst_39 : f32 to vector<1x16xf32>
    %76 = arith.maximumf %74, %75 : vector<1x16xf32>
    %77 = vector.extract_strided_slice %59 {offsets = [48, 0], sizes = [16, 16], strides = [1, 1]} : vector<64x16xf32> to vector<16x16xf32>
    %78 = vector.extract_strided_slice %60 {offsets = [2, 0], sizes = [1, 16], strides = [1, 1]} : vector<8x16xf32> to vector<1x16xf32>
    %cst_40 = arith.constant dense<0.000000e+00> : vector<1x16xf32>
    %79 = tpu.matmul %76, %77, %cst_40 {dimension_numbers = #tpu.dot_dimension_numbers<[1], [0], [0], [1], [0, 0, 1, 1], [], []>} : vector<1x16xf32>, vector<16x16xf32>, vector<1x16xf32> -> vector<1x16xf32>
    %80 = arith.addf %79, %78 : vector<1x16xf32>
    %81 = vector.shape_cast %80 : vector<1x16xf32> to vector<1x16xf32>
    %82 = vector.broadcast %81 : vector<1x16xf32> to vector<8x16xf32>
    %c0_41 = arith.constant 0 : index
    %c0_42 = arith.constant 0 : index
    %c0_43 = arith.constant 0 : index
    %83 = vector.load %arg16[%c0_41, %c0_42, %c0_43] : memref<1x8x16xf32, #tpu.memory_space<vmem>>, vector<1x8x16xf32>
    %84 = vector.shape_cast %83 : vector<1x8x16xf32> to vector<8x16xf32>
    %85 = vector.shape_cast %82 : vector<8x16xf32> to vector<1x8x16xf32>
    tpu.vector_store %arg16[%c0_41, %c0_42, %c0_43], %85 {strides = array<i32>} : memref<1x8x16xf32, #tpu.memory_space<vmem>>, vector<1x8x16xf32>,
    return
  }
  func.func @transform_0(%arg0: i32) -> (i32, i32, i32) {
    %c0_i32 = arith.constant 0 : i32
    %c0_i32_0 = arith.constant 0 : i32
    %c0_i32_1 = arith.constant 0 : i32
    return %arg0, %c0_i32, %c0_i32_0 : i32, i32, i32
  }
  func.func @transform_1(%arg0: i32) -> (i32, i32) {
    %c0_i32 = arith.constant 0 : i32
    %c0_i32_0 = arith.constant 0 : i32
    %c0_i32_1 = arith.constant 0 : i32
    return %c0_i32, %c0_i32_0 : i32, i32
  }
  func.func @transform_2(%arg0: i32) -> (i32, i32) {
    %c0_i32 = arith.constant 0 : i32
    %c0_i32_0 = arith.constant 0 : i32
    %c0_i32_1 = arith.constant 0 : i32
    return %c0_i32, %c0_i32_0 : i32, i32
  }
  func.func @transform_3(%arg0: i32) -> (i32, i32) {
    %c0_i32 = arith.constant 0 : i32
    %c0_i32_0 = arith.constant 0 : i32
    %c0_i32_1 = arith.constant 0 : i32
    return %c0_i32, %c0_i32_0 : i32, i32
  }
  func.func @transform_4(%arg0: i32) -> (i32, i32) {
    %c0_i32 = arith.constant 0 : i32
    %c0_i32_0 = arith.constant 0 : i32
    %c0_i32_1 = arith.constant 0 : i32
    return %c0_i32, %c0_i32_0 : i32, i32
  }
  func.func @transform_5(%arg0: i32) -> (i32, i32) {
    %c0_i32 = arith.constant 0 : i32
    %c0_i32_0 = arith.constant 0 : i32
    %c0_i32_1 = arith.constant 0 : i32
    return %c0_i32, %c0_i32_0 : i32, i32
  }
  func.func @transform_6(%arg0: i32) -> (i32, i32) {
    %c0_i32 = arith.constant 0 : i32
    %c0_i32_0 = arith.constant 0 : i32
    %c0_i32_1 = arith.constant 0 : i32
    return %c0_i32, %c0_i32_0 : i32, i32
  }
  func.func @transform_7(%arg0: i32) -> (i32, i32) {
    %c0_i32 = arith.constant 0 : i32
    %c0_i32_0 = arith.constant 0 : i32
    %c0_i32_1 = arith.constant 0 : i32
    return %c0_i32, %c0_i32_0 : i32, i32
  }
  func.func @transform_8(%arg0: i32) -> (i32, i32) {
    %c0_i32 = arith.constant 0 : i32
    %c0_i32_0 = arith.constant 0 : i32
    %c0_i32_1 = arith.constant 0 : i32
    return %c0_i32, %c0_i32_0 : i32, i32
  }
  func.func @transform_9(%arg0: i32) -> (i32, i32, i32) {
    %c0_i32 = arith.constant 0 : i32
    %c0_i32_0 = arith.constant 0 : i32
    %c0_i32_1 = arith.constant 0 : i32
    %c0_i32_2 = arith.constant 0 : i32
    return %c0_i32, %c0_i32_0, %c0_i32_1 : i32, i32, i32
  }
  func.func @transform_10(%arg0: i32) -> (i32, i32, i32) {
    %c0_i32 = arith.constant 0 : i32
    %c0_i32_0 = arith.constant 0 : i32
    %c0_i32_1 = arith.constant 0 : i32
    %c0_i32_2 = arith.constant 0 : i32
    return %c0_i32, %c0_i32_0, %c0_i32_1 : i32, i32, i32
  }
  func.func @transform_11(%arg0: i32) -> (i32, i32, i32) {
    %c0_i32 = arith.constant 0 : i32
    %c0_i32_0 = arith.constant 0 : i32
    %c0_i32_1 = arith.constant 0 : i32
    %c0_i32_2 = arith.constant 0 : i32
    return %c0_i32, %c0_i32_0, %c0_i32_1 : i32, i32, i32
  }
  func.func @transform_12(%arg0: i32) -> (i32, i32, i32) {
    %c0_i32 = arith.constant 0 : i32
    %c0_i32_0 = arith.constant 0 : i32
    %c0_i32_1 = arith.constant 0 : i32
    %c0_i32_2 = arith.constant 0 : i32
    return %c0_i32, %c0_i32_0, %c0_i32_1 : i32, i32, i32
  }
  func.func @transform_13(%arg0: i32) -> (i32, i32) {
    %c0_i32 = arith.constant 0 : i32
    %c0_i32_0 = arith.constant 0 : i32
    %c0_i32_1 = arith.constant 0 : i32
    return %c0_i32, %c0_i32_0 : i32, i32
  }
  func.func @transform_14(%arg0: i32) -> (i32, i32) {
    %c0_i32 = arith.constant 0 : i32
    %c0_i32_0 = arith.constant 0 : i32
    %c0_i32_1 = arith.constant 0 : i32
    return %c0_i32, %c0_i32_0 : i32, i32
  }
  func.func @transform_15(%arg0: i32) -> (i32, i32, i32) {
    %c0_i32 = arith.constant 0 : i32
    %c0_i32_0 = arith.constant 0 : i32
    %c0_i32_1 = arith.constant 0 : i32
    return %arg0, %c0_i32, %c0_i32_0 : i32, i32, i32
  }
}

</mosaic_0001>

<bundles_post_ra>
// kernel: tpu_custom_call.1
= control target key start
LH: loop header
LB: loop body
LE: loop exit
PB: predicated region body
PF: predicated region fallthrough
CT: control target
= control target key end

     0   :  { %s7213_s0 = inlined_call_operand.vmem [shape: f32[4,32,8], index: 0, kind: input, shape index: {}]   ;;  %s7214_s1 = inlined_call_operand.vmem [shape: f32[80,32], index: 1, kind: input, shape index: {}]   ;;  %s7215_s2 = inlined_call_operand.vmem [shape: f32[352,24], index: 2, kind: input, shape index: {}]   ;;  %s7216_s3 = inlined_call_operand.vmem [shape: f32[48,16], index: 3, kind: input, shape index: {}]   ;;  %s7217_s4 = inlined_call_operand.vmem [shape: f32[16,24], index: 4, kind: input, shape index: {}]   ;;  %s7218_s5 = inlined_call_operand.vmem [shape: f32[32,32], index: 5, kind: input, shape index: {}]   ;;  %s7219_s6 = inlined_call_operand.vmem [shape: f32[8,32], index: 6, kind: input, shape index: {}]   ;;  %s7220_s7 = inlined_call_operand.vmem [shape: f32[64,16], index: 7, kind: input, shape index: {}]   ;;  %s7221_s8 = inlined_call_operand.vmem [shape: f32[8,16], index: 8, kind: input, shape index: {}]   ;;  %s7222_s9 = inlined_call_operand.vmem [shape: f32[2,336,32], index: 9, kind: input, shape index: {}]   ;;  %s7223_s10 = inlined_call_operand.vmem [shape: f32[2,8,32], index: 10, kind: input, shape index: {}]   ;;  %s7224_s11 = inlined_call_operand.vmem [shape: f32[2,128,16], index: 11, kind: input, shape index: {}]   ;;  %s7225_s12 = inlined_call_operand.vmem [shape: f32[2,8,16], index: 12, kind: input, shape index: {}]   ;;  %s7226_s13 = inlined_call_operand.vmem [shape: f32[64,16], index: 13, kind: input, shape index: {}]   ;;  %s7227_s14 = inlined_call_operand.vmem [shape: f32[8,16], index: 14, kind: input, shape index: {}]   ;;  %s7228_s15 = inlined_call_operand.hbm [shape: f32[4,8,16], index: 15, kind: output, shape index: {}]  }
   0x1   :  { %7241 = sst [smem:[#allocation55_spill]] %s7213_s0 }
   0x2   :  { %7242 = sst [smem:[#allocation56_spill]] %s7214_s1 }
   0x3   :  { %7243 = sst [smem:[#allocation57_spill]] %s7215_s2 }
   0x4   :  { %20 = vsyncpa [#allocation3], 0 }
   0x5   :  { %22 = vsyncpa [#allocation3 + $0x1], 0  ;;  %s6021_s18 = smov 0   ;;  %s6023_s19 = smov 0  }
   0x6   :  { %s6025_s20 = smov 0   ;;  %s6027_s21 = smov 0  }
   0x7 LB: > { %7244 = sst [smem:[#allocation5_spill]] %s5906_s20  ;;  %s6042_s22 = sadd.s32 4294967295, %s5910_s21   ;;  %s5910_s21 = sphi %s6027_s21, %s7355_s21   ;;  %s5906_s20 = sphi %s6025_s20, %s7357_s20   ;;  %s5902_s19 = sphi %s6023_s19, %s7359_s19   ;;  %s5898_s18 = sphi %s6021_s18, %s7358_s18  }
   0x8   : > { %s4791_s23 = sadd.s32 4294967294, %s5910_s21   ;;  %s6046_s24 = sadd.s32 1, %s5910_s21  }
   0x9   : > { %7245 = sst [smem:[#allocation6_spill]] %s6046_s24  ;;  %s355_s25 = sadd.s32 1, %s5906_s20 }
   0xa   : > { %s352_s26 = ssub.s32 %s5910_s21, %s6046_s24  ;;  %p365_p0 = scmp.ne.s32.totalorder %s5906_s20, %s5902_s19 }
   0xb   : > { %p353_p1 = scmp.eq.s32.totalorder %s352_s26, 0  ;;  %p366_p2 = scmp.eq.s32.totalorder %s6042_s22, 3 }
   0xc   : > { %p371_p3 = scmp.ne.s32.totalorder %s5902_s19, %s5898_s18  ;;  %p372_p4 = scmp.eq.s32.totalorder %s4791_s23, 3 }
   0xd   : > { %s6057_s27 = scalar_select %p353_p1, %s5906_s20, %s355_s25  }
   0xe   : > { %p6059_p5 = por %p366_p2, %p365_p0  ;;  %p6063_p6 = por %p372_p4, %p371_p3 }
   0xf   : > { %7246 = sst [smem:[#allocation7_spill]] %s6057_s27  ;;  %p4794_p7 = scmp.ge.s32.totalorder %s5910_s21, 1 }
  0x10   : > { %p440_p8 = scmp.lt.s32.totalorder %s5910_s21, 5 }
  0x12   : > { %p441_p9 = pnand %p4794_p7, %p440_p8 }
  0x14   : > { %444 = sbr.rel (%p441_p9) target bundleno = 2608 (0xa30), region = 80 }
  0x19   : > { %s7232_s30 = sand.u32 1, %s5902_s19   ;;  %p488_p10 = scmp.lt.s32.totalorder %s6042_s22, 3  ;;  %vm507_vm0 = vcmask 261120   ;;  %v7233_v1 = vmov 0.0   ;;  %v653_v8 = vld [vmem:[%s7218_s5] sm:$0xff]  ;;  %vm5937_vm1 = vmmov 0   ;;  %v846_v34 = vlaneseq }
  0x1a   : > { %s7249_s1 = sld [smem:[#allocation56_spill]]  ;;  %s6076_s23 = sshll.u32 %s7232_s30, 3  ;;  %5226 = vmatprep.subr.mxu1 %v7233_v1  ;;  %5228 = vmatprep.mubr.msk.f32.mxu1 %vm5937_vm1, %v7233_v1  ;;  %v654_v16 = vld [vmem:[%s7218_s5 + $0x8] sm:$0xff]  ;;  %v656_v17 = vld [vmem:[%s7218_s5 + $0x18] sm:$0xff]  ;;  %vm667_vm2 = vcmask 64512   ;;  %v655_v20 = vld [vmem:[%s7218_s5 + $0x10] sm:$0xff] }
  0x1b   : > { %s489_s25 = scalar_select %p488_p10, %s6042_s22, 3  ;;  %5227 = vmatpush3.msra.mxu1 %v654_v16  ;;  %v661_v29 = vld [vmem:[%s7220_s7 + $0x18] sm:$0xff]  ;;  %v660_v30 = vld [vmem:[%s7220_s7 + $0x10] sm:$0xff]  ;;  %v659_v31 = vld [vmem:[%s7220_s7 + $0x8] sm:$0xff]  ;;  %v6177_v35 = vshrl.u32 %v846_v34, 7 }
  0x1c   : > { %s7250_s0 = sld [smem:[#allocation55_spill]]  ;;  %5729 = vmatprep.subr.mxu1 %v7233_v1  ;;  %v658_v32 = vld [vmem:[%s7220_s7] sm:$0xff]  ;;  %v665_v33 = vld [vmem:[%s7220_s7 + $0x38] sm:$0xff]  ;;  %v664_v47 = vld [vmem:[%s7220_s7 + $0x30] sm:$0xff] }
  0x1d   : > { %s4957_s26 = sshll.u32 %s489_s25, 5  ;;  %7251 = vst [vmem:[#allocation8_spill] sm:$0xff] %v6177_v35  ;;  %v6180_v36 = vsub.s32 0, %v6177_v35  ;;  %v657_v37 = vld [vmem:[%s7219_s6] sm:$0xff]  ;;  %v663_v49 = vld [vmem:[%s7220_s7 + $0x28] sm:$0xff]  ;;  %v6199_v56 = vsub.s32 1, %v6177_v35 }
  0x1e   : > { %v662_v51 = vld [vmem:[%s7220_s7 + $0x20] sm:$0xff]  ;;  %s7253_s2 = sld [smem:[#allocation57_spill]] }
  0x1f   : > { %7252 = vst [vmem:[#allocation9_spill] sm:$0xff] %v6180_v36  ;;  %v849_v39 = vrot.slane %v657_v37, %v6180_v36 }
  0x20   : > { %v497_v0 = vld [vmem:[%s7249_s1] sm:$0xff]  ;;  %v498_v6 = vld [vmem:[%s7249_s1 + $0x8] sm:$0xff]  ;;  %v499_v7 = vld [vmem:[%s7249_s1 + $0x10] sm:$0xff] }
  0x21   : > { %5211 = vmatprep.mubr.msk.f32.mxu0 %vm507_vm0, %v497_v0  ;;  %v500_v9 = vld [vmem:[%s7249_s1 + $0x18] sm:$0xff]  ;;  %v501_v10 = vld [vmem:[%s7249_s1 + $0x20] sm:$0xff]  ;;  %v502_v11 = vld [vmem:[%s7249_s1 + $0x28] sm:$0xff]  ;;  %v1117_v0 = vrot.slane %v657_v37, %v6199_v56 }
  0x22   : > { %s492_s24 = scalar_lea.vmem %s7250_s0, %s4957_s26  ;;  %v503_v12 = vld [vmem:[%s7249_s1 + $0x30] sm:$0xff]  ;;  %v504_v13 = vld [vmem:[%s7249_s1 + $0x38] sm:$0xff]  ;;  %v505_v14 = vld [vmem:[%s7249_s1 + $0x40] sm:$0xff]  ;;  %s6474_s26 = smov 0  }
  0x23   : > { %v496_v2 = vld [vmem:[%s492_s24 + $0x18] sm:$0xff]  ;;  %v495_v3 = vld [vmem:[%s492_s24 + $0x10] sm:$0xff]  ;;  %v494_v4 = vld [vmem:[%s492_s24 + $0x8] sm:$0xff] }
  0x24   : > { %5203 = vmatprep.subr.mxu0 %v496_v2  ;;  %v493_v5 = vld [vmem:[%s492_s24] sm:$0xff]  ;;  %v506_v15 = vld [vmem:[%s7249_s1 + $0x48] sm:$0xff]  ;;  %v6321_v34 = vld [vmem:[%s7253_s2 + $0xb0] sm:$0xff]  ;;  %s487_s24 = scalar_lea.vmem [#allocation2], %s6076_s23 }
  0x25   : > { %5204 = vmatpush3.msra.mxu0 %v496_v2  ;;  %v6231_v16 = vld [vmem:[%s7253_s2 + $0x20] sm:$0xff]  ;;  %7276 = vst [vmem:[#allocation32_spill] sm:$0xff] %v6321_v34  ;;  %v6326_v37 = vld [vmem:[%s7253_s2 + $0xb8] sm:$0xff] }
  0x26   : > { %5205 = vmatprep.subr.mxu0 %v495_v3  ;;  %7258 = vst [vmem:[#allocation14_spill] sm:$0xff] %v6231_v16  ;;  %7277 = vst [vmem:[#allocation33_spill] sm:$0xff] %v6326_v37 }
  0x27   : > { %5206 = vmatpush3.msra.mxu0 %v495_v3 }
  0x28   : > { %5207 = vmatprep.subr.mxu0 %v494_v4 }
  0x29   : > { %5208 = vmatpush3.msra.mxu0 %v494_v4 }
  0x2a   : > { %5209 = vmatprep.subr.mxu0 %v493_v5 }
  0x2b   : > { %5210 = vmatpush3.msra.mxu0 %v493_v5 }
  0x2c   : > { %5212 = vmatmul.mubr.msk.f32.vlgmr.msra.gmra.mxu0 %vm507_vm0, %v498_v6  ;;  %5237 = vmatprep.subr.mxu0 %v7233_v1 }
  0x2d   : > { %5214 = vmatprep.mubr.msk.f32.mxu0 %vm507_vm0, %v499_v7  ;;  %5238 = vmatpush3.msra.mxu0 %v653_v8 }
  0x2e   : > { %5265 = vmatprep.subr.mxu0 %v656_v17 }
  0x30   : > { %5215 = vmatmul.mubr.msk.f32.gmra.mxu0 %vm507_vm0, %v500_v9 }
  0x31   : > { %5217 = vmatprep.mubr.msk.f32.mxu0 %vm507_vm0, %v501_v10 }
  0x34   : > { %5218 = vmatmul.mubr.msk.f32.gmra.mxu0 %vm507_vm0, %v502_v11 }
  0x35   : > { %5220 = vmatprep.mubr.msk.f32.mxu0 %vm507_vm0, %v503_v12  ;;  %v6211_v12 = vld [vmem:[%s7253_s2] sm:$0xff] }
  0x36   : > { %7254 = vst [vmem:[#allocation10_spill] sm:$0xff] %v6211_v12 }
  0x38   : > { %5221 = vmatmul.mubr.msk.f32.gmra.mxu0 %vm507_vm0, %v504_v13  ;;  %v6216_v13 = vld [vmem:[%s7253_s2 + $0x8] sm:$0xff] }
  0x39   : > { %5223 = vmatprep.mubr.msk.f32.mxu0 %vm507_vm0, %v505_v14  ;;  %7255 = vst [vmem:[#allocation11_spill] sm:$0xff] %v6216_v13  ;;  %v6221_v14 = vld [vmem:[%s7253_s2 + $0x10] sm:$0xff] }
  0x3a   : > { %7256 = vst [vmem:[#allocation12_spill] sm:$0xff] %v6221_v14 }
  0x3c   : > { %5224 = vmatmul.mubr.msk.f32.gmra.mxu0 %vm507_vm0, %v506_v15  ;;  %v6226_v15 = vld [vmem:[%s7253_s2 + $0x18] sm:$0xff] }
  0x3d   : > { %5239 = vmatprep.mubr.msk.f32.mxu0 %vm5937_vm1, %v7233_v1  ;;  %7257 = vst [vmem:[#allocation13_spill] sm:$0xff] %v6226_v15 }
  0xec   : > { %v5213_v18 = vpop.f32.mrf.mxu0 }
  0xee   : > { %v604_v19 = vpop.f32.mrf.mxu0 }
  0xef   : > { %5240 = vmatmul.mubr.msk.f32.vlgmr.msra.gmra.mxu0 %vm667_vm2, %v604_v19  ;;  %v6246_v19 = vld [vmem:[%s7253_s2 + $0x38] sm:$0xff] }
  0xf0   : > { %v5216_v21 = vpop.f32.mrf.mxu0  ;;  %5266 = vmatpush3.msra.mxu0 %v656_v17  ;;  %v6236_v17 = vld [vmem:[%s7253_s2 + $0x28] sm:$0xff]  ;;  %7261 = vst [vmem:[#allocation17_spill] sm:$0xff] %v6246_v19 }
  0xf1   : > { %5229 = vmatmul.mubr.msk.f32.vlgmr.msra.gmra.mxu1 %vm667_vm2, %v5216_v21  ;;  %5270 = vmatprep.subr.mxu0 %v655_v20  ;;  %7259 = vst [vmem:[#allocation15_spill] sm:$0xff] %v6236_v17  ;;  %v6256_v21 = vld [vmem:[%s7253_s2 + $0x48] sm:$0xff] }
  0xf2   : > { %v614_v22 = vpop.f32.mrf.mxu0  ;;  %5730 = vmatpush3.msra.mxu1 %v653_v8  ;;  %5231 = vmatprep.mubr.msk.f32.mxu1 %vm5937_vm1, %v7233_v1  ;;  %7263 = vst [vmem:[#allocation19_spill] sm:$0xff] %v6256_v21 }
  0xf3   : > { %5248 = vmatprep.subr.mxu1 %v7233_v1 }
  0xf4   : > { %v5219_v23 = vpop.f32.mrf.mxu0 }
  0xf6   : > { %v624_v24 = vpop.f32.mrf.mxu0 }
  0xf7   : > { %5232 = vmatmul.mubr.msk.f32.gmra.mxu1 %vm667_vm2, %v624_v24  ;;  %v6271_v24 = vld [vmem:[%s7253_s2 + $0x60] sm:$0xff] }
  0xf8   : > { %v5222_v25 = vpop.f32.mrf.mxu0  ;;  %5234 = vmatprep.mubr.msk.f32.mxu1 %vm5937_vm1, %v7233_v1  ;;  %7266 = vst [vmem:[#allocation22_spill] sm:$0xff] %v6271_v24 }
  0xfa   : > { %v634_v26 = vpop.f32.mrf.mxu0 }
  0xfb   : > { %5235 = vmatmul.mubr.msk.f32.gmra.mxu1 %vm667_vm2, %v5219_v23  ;;  %v6266_v23 = vld [vmem:[%s7253_s2 + $0x58] sm:$0xff] }
  0xfc   : > { %v5225_v27 = vpop.f32.mrf.mxu0  ;;  %5242 = vmatprep.mubr.msk.f32.mxu1 %vm5937_vm1, %v7233_v1  ;;  %7265 = vst [vmem:[#allocation21_spill] sm:$0xff] %v6266_v23 }
  0xfe   : > { %v644_v28 = vpop.f32.mrf.mxu0 }
  0xff   : > { %5243 = vmatmul.mubr.msk.f32.vlgmr.msra.gmra.mxu1 %vm667_vm2, %v5213_v18  ;;  %5267 = vmatprep.mubr.msk.f32.mxu0 %vm667_vm2, %v644_v28  ;;  %v6241_v18 = vld [vmem:[%s7253_s2 + $0x30] sm:$0xff]  ;;  %v6291_v28 = vld [vmem:[%s7253_s2 + $0x80] sm:$0xff] }
 0x100   : > { %5268 = vmatmul.mubr.msk.f32.vlgmr.msra.gmra.mxu0 %vm667_vm2, %v5225_v27  ;;  %5245 = vmatprep.mubr.msk.f32.mxu1 %vm5937_vm1, %v7233_v1  ;;  %7260 = vst [vmem:[#allocation16_spill] sm:$0xff] %v6241_v18  ;;  %v6286_v27 = vld [vmem:[%s7253_s2 + $0x78] sm:$0xff]  ;;  %7270 = vst [vmem:[#allocation26_spill] sm:$0xff] %v6291_v28 }
 0x101   : > { %5271 = vmatpush3.msra.mxu0 %v655_v20  ;;  %5272 = vmatprep.mubr.msk.f32.mxu0 %vm667_vm2, %v634_v26  ;;  %v6251_v20 = vld [vmem:[%s7253_s2 + $0x40] sm:$0xff]  ;;  %v6281_v26 = vld [vmem:[%s7253_s2 + $0x70] sm:$0xff]  ;;  %7269 = vst [vmem:[#allocation25_spill] sm:$0xff] %v6286_v27 }
 0x102   : > { %5249 = vmatpush3.msra.mxu1 %v661_v29  ;;  %7262 = vst [vmem:[#allocation18_spill] sm:$0xff] %v6251_v20  ;;  %7268 = vst [vmem:[#allocation24_spill] sm:$0xff] %v6281_v26  ;;  %v6296_v29 = vld [vmem:[%s7253_s2 + $0x88] sm:$0xff] }
 0x103   : > { %5246 = vmatmul.mubr.msk.f32.gmra.mxu1 %vm667_vm2, %v614_v22  ;;  %5250 = vmatprep.subr.mxu1 %v7233_v1  ;;  %v6261_v22 = vld [vmem:[%s7253_s2 + $0x50] sm:$0xff]  ;;  %7271 = vst [vmem:[#allocation27_spill] sm:$0xff] %v6296_v29 }
 0x104   : > { %5273 = vmatmul.mubr.msk.f32.vlgmr.msra.gmra.mxu0 %vm667_vm2, %v5222_v25  ;;  %5256 = vmatprep.mubr.msk.f32.mxu1 %vm5937_vm1, %v7233_v1  ;;  %7264 = vst [vmem:[#allocation20_spill] sm:$0xff] %v6261_v22  ;;  %v6276_v25 = vld [vmem:[%s7253_s2 + $0x68] sm:$0xff] }
 0x105   : > { %5251 = vmatpush3.msra.mxu1 %v660_v30  ;;  %7267 = vst [vmem:[#allocation23_spill] sm:$0xff] %v6276_v25  ;;  %v6301_v30 = vld [vmem:[%s7253_s2 + $0x90] sm:$0xff] }
 0x106   : > { %5252 = vmatprep.subr.mxu1 %v7233_v1  ;;  %7272 = vst [vmem:[#allocation28_spill] sm:$0xff] %v6301_v30 }
 0x107   : > { %5253 = vmatpush3.msra.mxu1 %v659_v31  ;;  %v6306_v31 = vld [vmem:[%s7253_s2 + $0x98] sm:$0xff] }
 0x108   : > { %5254 = vmatprep.subr.mxu1 %v7233_v1  ;;  %7273 = vst [vmem:[#allocation29_spill] sm:$0xff] %v6306_v31 }
 0x109   : > { %5255 = vmatpush3.msra.mxu1 %v658_v32  ;;  %v6311_v32 = vld [vmem:[%s7253_s2 + $0xa0] sm:$0xff] }
 0x10a   : > { %5275 = vmatprep.subr.mxu1 %v665_v33  ;;  %7274 = vst [vmem:[#allocation30_spill] sm:$0xff] %v6311_v32 }
 0x1af   : > { %v832_v38 = vpop.f32.mrf.mxu0 }
 0x1b1   : > { %v743_v40 = vpop.f32.mrf.mxu1  ;;  %v5241_v41 = vpop.f32.mrf.mxu0 }
 0x1b2   : > { %v833_v42 = vadd.f32 %v832_v38, %v743_v40  ;;  %v6331_v38 = vld [vmem:[%s7253_s2 + $0xc0] sm:$0xff]  ;;  %v6341_v40 = vld [vmem:[%s7253_s2 + $0xd0] sm:$0xff]  ;;  %v6346_v41 = vld [vmem:[%s7253_s2 + $0xd8] sm:$0xff] }
 0x1b3   : > { %v5230_v43 = vpop.f32.mrf.mxu1  ;;  %7278 = vst [vmem:[#allocation34_spill] sm:$0xff] %v6331_v38  ;;  %7280 = vst [vmem:[#allocation36_spill] sm:$0xff] %v6341_v40 }
 0x1b4   : > { %v850_v44 = vadd.f32 %v849_v39, %v833_v42  ;;  %7281 = vst [vmem:[#allocation37_spill] sm:$0xff] %v6346_v41  ;;  %v6351_v42 = vld [vmem:[%s7253_s2 + $0xe0] sm:$0xff]  ;;  %v6356_v43 = vld [vmem:[%s7253_s2 + $0xe8] sm:$0xff] }
 0x1b5   : > { %7282 = vst [vmem:[#allocation38_spill] sm:$0xff] %v6351_v42  ;;  %7283 = vst [vmem:[#allocation39_spill] sm:$0xff] %v6356_v43 }
 0x1b6   : > { %v853_v45 = vmax.f32 %v850_v44, 0.0  ;;  %v6361_v44 = vld [vmem:[%s7253_s2 + $0xf0] sm:$0xff] }
 0x1b7   : > { %v748_v46 = vpop.f32.mrf.mxu1  ;;  %7284 = vst [vmem:[#allocation40_spill] sm:$0xff] %v6361_v44 }
 0x1b8   : > { %5257 = vmatmul.mubr.msk.f32.vlgmr.msra.gmra.mxu1 %vm507_vm0, %v853_v45  ;;  %v6366_v45 = vld [vmem:[%s7253_s2 + $0xf8] sm:$0xff] }
 0x1b9   : > { %v5233_v48 = vpop.f32.mrf.mxu1  ;;  %5276 = vmatpush3.msra.mxu1 %v665_v33  ;;  %5259 = vmatprep.mubr.msk.f32.mxu1 %vm5937_vm1, %v7233_v1  ;;  %v6316_v33 = vld [vmem:[%s7253_s2 + $0xa8] sm:$0xff]  ;;  %7285 = vst [vmem:[#allocation41_spill] sm:$0xff] %v6366_v45 }
 0x1ba   : > { %5277 = vmatprep.subr.mxu1 %v664_v47  ;;  %7275 = vst [vmem:[#allocation31_spill] sm:$0xff] %v6316_v33  ;;  %v6381_v48 = vld [vmem:[%s7253_s2 + $0x110] sm:$0xff] }
 0x1bb   : > { %v753_v50 = vpop.f32.mrf.mxu1  ;;  %5278 = vmatpush3.msra.mxu1 %v664_v47  ;;  %v6376_v47 = vld [vmem:[%s7253_s2 + $0x108] sm:$0xff]  ;;  %7288 = vst [vmem:[#allocation44_spill] sm:$0xff] %v6381_v48 }
 0x1bc   : > { %5279 = vmatprep.subr.mxu1 %v663_v49  ;;  %7287 = vst [vmem:[#allocation43_spill] sm:$0xff] %v6376_v47 }
 0x1bd   : > { %v5236_v52 = vpop.f32.mrf.mxu1  ;;  %5280 = vmatpush3.msra.mxu1 %v663_v49  ;;  %v6386_v49 = vld [vmem:[%s7253_s2 + $0x118] sm:$0xff] }
 0x1be   : > { %5281 = vmatprep.subr.mxu1 %v662_v51  ;;  %7289 = vst [vmem:[#allocation45_spill] sm:$0xff] %v6386_v49  ;;  %v6401_v52 = vld [vmem:[%s7253_s2 + $0x130] sm:$0xff] }
 0x1bf   : > { %v837_v53 = vpop.f32.mrf.mxu1  ;;  %5282 = vmatpush3.msra.mxu1 %v662_v51  ;;  %v6396_v51 = vld [vmem:[%s7253_s2 + $0x128] sm:$0xff]  ;;  %7292 = vst [vmem:[#allocation48_spill] sm:$0xff] %v6401_v52 }
 0x1c0   : > { %v838_v54 = vadd.f32 %v837_v53, %v748_v46  ;;  %v5269_v55 = vpop.f32.mrf.mxu0  ;;  %v6371_v46 = vld [vmem:[%s7253_s2 + $0x100] sm:$0xff]  ;;  %7291 = vst [vmem:[#allocation47_spill] sm:$0xff] %v6396_v51  ;;  %v6406_v53 = vld [vmem:[%s7253_s2 + $0x138] sm:$0xff] }
 0x1c1   : > { %v5244_v57 = vpop.f32.mrf.mxu1  ;;  %7286 = vst [vmem:[#allocation42_spill] sm:$0xff] %v6371_v46  ;;  %7293 = vst [vmem:[#allocation49_spill] sm:$0xff] %v6406_v53 }
 0x1c2   : > { %v851_v58 = vadd.f32 %v849_v39, %v838_v54  ;;  %v1024_v59 = vpop.f32.mrf.mxu0  ;;  %v6411_v54 = vld [vmem:[%s7253_s2 + $0x140] sm:$0xff]  ;;  %v6421_v57 = vld [vmem:[%s7253_s2 + $0x150] sm:$0xff] }
 0x1c3   : > { %v842_v60 = vpop.f32.mrf.mxu1  ;;  %7294 = vst [vmem:[#allocation50_spill] sm:$0xff] %v6411_v54  ;;  %7296 = vst [vmem:[#allocation52_spill] sm:$0xff] %v6421_v57 }
 0x1c4   : > { %v854_v61 = vmax.f32 %v851_v58, 0.0  ;;  %v843_v62 = vadd.f32 %v842_v60, %v753_v50  ;;  %v5274_v63 = vpop.f32.mrf.mxu0  ;;  %v6391_v50 = vld [vmem:[%s7253_s2 + $0x120] sm:$0xff]  ;;  %v6426_v58 = vld [vmem:[%s7253_s2 + $0x158] sm:$0xff]  ;;  %v6436_v60 = vld [vmem:[%s7216_s3 + $0x8] sm:$0xff] }
 0x1c5   : > { %v1111_v2 = vadd.f32 %v5274_v63, %v5269_v55  ;;  %v5247_v3 = vpop.f32.mrf.mxu1  ;;  %7290 = vst [vmem:[#allocation46_spill] sm:$0xff] %v6391_v50  ;;  %v6416_v55 = vld [vmem:[%s7253_s2 + $0x148] sm:$0xff]  ;;  %7297 = vst [vmem:[#allocation53_spill] sm:$0xff] %v6426_v58  ;;  %v6451_v63 = vld [vmem:[%s7216_s3 + $0x20] sm:$0xff] }
 0x1c6   : > { %v852_v4 = vadd.f32 %v849_v39, %v843_v62  ;;  %5260 = vmatmul.mubr.msk.f32.gmra.mxu1 %vm507_vm0, %v854_v61  ;;  %v1105_v5 = vpop.f32.mrf.mxu0  ;;  %v6336_v39 = vld [vmem:[%s7253_s2 + $0xc8] sm:$0xff]  ;;  %7295 = vst [vmem:[#allocation51_spill] sm:$0xff] %v6416_v55  ;;  %v6441_v61 = vld [vmem:[%s7216_s3 + $0x10] sm:$0xff]  ;;  %v6446_v62 = vld [vmem:[%s7216_s3 + $0x18] sm:$0xff] }
 0x1c7   : > { %v1106_v6 = vadd.f32 %v1105_v5, %v1024_v59  ;;  %5262 = vmatprep.mubr.msk.f32.mxu1 %vm5937_vm1, %v7233_v1  ;;  %v1119_v8 = vadd.f32 %v1117_v0, %v1111_v2  ;;  %7279 = vst [vmem:[#allocation35_spill] sm:$0xff] %v6336_v39  ;;  %v6431_v59 = vld [vmem:[%s7216_s3] sm:$0xff] }
 0x1c8   : > { %v855_v7 = vmax.f32 %v852_v4, 0.0  ;;  %v666_v2 = vld [vmem:[%s7221_s8] sm:$0xff] }
 0x1c9   : > { %v1118_v9 = vadd.f32 %v1117_v0, %v1106_v6  ;;  %v1121_v11 = vmax.f32 %v1119_v8, 0.0  ;;  %v6456_v0 = vld [vmem:[%s7216_s3 + $0x28] sm:$0xff]  ;;  %v859_v3 = vrot.slane %v666_v2, %v6180_v36  ;;  %v1125_v58 = vrot.slane %v666_v2, %v6199_v56 }
 0x1ca   : > { %5263 = vmatmul.mubr.msk.f32.gmra.mxu1 %vm507_vm0, %v855_v7  ;;  %7298 = vst [vmem:[#allocation54_spill] sm:$0xff] %v6456_v0 }
 0x1cb   : > { %v1120_v10 = vmax.f32 %v1118_v9, 0.0 }
 0x1cd   : > { %5283 = vmatprep.mubr.msk.f32.mxu1 %vm507_vm0, %v1120_v10 }
 0x1ce   : > { %5284 = vmatmul.mubr.msk.f32.vlgmr.msra.gmra.mxu1 %vm507_vm0, %v1121_v11 }
 0x278   : > { %v935_v4 = vpop.f32.mrf.mxu1 }
 0x279   : > { %v936_v5 = vadd.f32 %v935_v4, %v859_v3 }
 0x27a   : > { %v5258_v6 = vpop.f32.mrf.mxu1 }
 0x27b   : > { %v949_v7 = vmax.f32 %v936_v5, 0.0  }
 0x286   : > { %v940_v8 = vpop.f32.mrf.mxu1 }
 0x287   : > { %v941_v9 = vadd.f32 %v940_v8, %v859_v3 }
 0x288   : > { %v5261_v10 = vpop.f32.mrf.mxu1 }
 0x289   : > { %v950_v11 = vmax.f32 %v941_v9, 0.0  }
 0x28a   : > { %v945_v1 = vpop.f32.mrf.mxu1 }
 0x28b   : > { %v946_v35 = vadd.f32 %v945_v1, %v859_v3 }
 0x28c   : > { %v5264_v57 = vpop.f32.mrf.mxu1 }
 0x28d   : > { %v951_v55 = vmax.f32 %v946_v35, 0.0  }
 0x28e   : > { %v5285_v54 = vpop.f32.mrf.mxu1 }
 0x28f   : > { %v1204_v53 = vadd.f32 %v5285_v54, %v1125_v58 }
 0x290   : > { %v1198_v52 = vpop.f32.mrf.mxu1 }
 0x291   : > { %v1208_v51 = vmax.f32 %v1204_v53, 0.0   ;;  %v1199_v36 = vadd.f32 %v1198_v52, %v1125_v58 }
 0x293   : > { %v1207_v50 = vmax.f32 %v1199_v36, 0.0  }
 0x294 LB: >> { %vm1337_vm3 = vcmask 195584   ;;  %v7299_v12 = vld [vmem:[#allocation10_spill] sm:$0xff]  ;;  %5286 = vmatprep.subr.mxu0 %v5922_v55  ;;  %s1270_s16 = smul.u32 336, %s5934_s26  ;;  %vm1755_vm4 = vcmask 130048   ;;  %5358 = vmatprep.subr.mxu1 %v5914_v51  ;;  %v7300_v13 = vld [vmem:[#allocation11_spill] sm:$0xff]  ;;  %v7239_v35 = vmov 0.0   ;;  %s5934_s26 = sphi %s6474_s26, %s1264_s26   ;;  %v5930_v7 = vphi %v949_v7, %v7351_v7   ;;  %v5926_v11 = vphi %v950_v11, %v7350_v11   ;;  %v5922_v55 = vphi %v951_v55, %v7349_v55   ;;  %v5918_v50 = vphi %v1207_v50, %v7348_v50   ;;  %v5914_v51 = vphi %v1208_v51, %v7347_v51  }
 0x295   : >> { %5292 = vmatprep.mubr.msk.f32.mxu0 %vm1337_vm3, %v7299_v12  ;;  %5287 = vmatpush3.msra.mxu0 %v5922_v55  ;;  %v7301_v14 = vld [vmem:[#allocation12_spill] sm:$0xff]  ;;  %v7302_v15 = vld [vmem:[#allocation13_spill] sm:$0xff]  ;;  %v7303_v16 = vld [vmem:[#allocation14_spill] sm:$0xff]  ;;  %vm5939_vm5 = vmmov 0   ;;  %s4824_s0 = sshll.u32 %s5934_s26, 7 }
 0x296   : >> { %5362 = vmatprep.mubr.msk.f32.mxu1 %vm1755_vm4, %v6431_v59  ;;  %5288 = vmatprep.subr.mxu0 %v5926_v11  ;;  %s6507_s25 = scalar_lea.vmem %s7222_s9, %s1270_s16  ;;  %v7304_v17 = vld [vmem:[#allocation15_spill] sm:$0xff]  ;;  %v7305_v18 = vld [vmem:[#allocation16_spill] sm:$0xff]  ;;  %v7306_v0 = vld [vmem:[#allocation54_spill] sm:$0xff]  ;;  %s6812_s27 = scalar_lea.vmem %s7224_s11, %s4824_s0 }
 0x297   : >> { %5289 = vmatpush3.msra.mxu0 %v5926_v11  ;;  %5359 = vmatpush3.msra.mxu1 %v5914_v51  ;;  %v6512_v1 = vld [vmem:[%s6507_s25 + $0x48] sm:$0xff]  ;;  %v1275_v36 = vld [vmem:[%s6507_s25 + $0x18] sm:$0xff]  ;;  %v1274_v52 = vld [vmem:[%s6507_s25 + $0x10] sm:$0xff]  ;;  %s4823_s16 = sshll.u32 %s5934_s26, 3  ;;  %s1264_s26 = sadd.s32 1, %s5934_s26  }
 0x298   : >> { %5290 = vmatprep.subr.mxu0 %v5930_v7  ;;  %5360 = vmatprep.subr.mxu1 %v5918_v50  ;;  %v7307_v19 = vld [vmem:[#allocation17_spill] sm:$0xff]  ;;  %v7308_v20 = vld [vmem:[#allocation18_spill] sm:$0xff]  ;;  %v7309_v21 = vld [vmem:[#allocation19_spill] sm:$0xff]  ;;  %s1315_s0 = scalar_lea.vmem %s7223_s10, %s4823_s16  ;;  %s1335_s20 = scalar_lea.vmem %s7225_s12, %s4823_s16 }
 0x299   : >> { %5291 = vmatpush3.msra.mxu0 %v5930_v7  ;;  %5361 = vmatpush3.msra.mxu1 %v5918_v50  ;;  %v7310_v22 = vld [vmem:[#allocation20_spill] sm:$0xff]  ;;  %v7311_v23 = vld [vmem:[#allocation21_spill] sm:$0xff]  ;;  %v7312_v24 = vld [vmem:[#allocation22_spill] sm:$0xff]  ;;  %p1261_p11 = scmp.ge.s32.totalorder %s1264_s26, 2  }
 0x29a   : >> { %5293 = vmatmul.mubr.msk.f32.vlgmr.msra.gmra.mxu0 %vm1337_vm3, %v7300_v13  ;;  %5423 = vmatprep.subr.mxu0 %v7239_v35  ;;  %v7313_v25 = vld [vmem:[#allocation23_spill] sm:$0xff]  ;;  %v7314_v26 = vld [vmem:[#allocation24_spill] sm:$0xff]  ;;  %v7315_v27 = vld [vmem:[#allocation25_spill] sm:$0xff]  ;;  %s4954_s30 = sshll.u32 (%p1261_p11), %s6042_s22, 7  ;;  %s5940_s22 = smov (%p1261_p11), [#allocation2]  }
 0x29b   : >> { %5295 = vmatprep.mubr.msk.f32.mxu0 %vm1337_vm3, %v7301_v14  ;;  %5424 = vmatpush3.msra.mxu0 %v6512_v1  ;;  %v7316_v28 = vld [vmem:[#allocation26_spill] sm:$0xff]  ;;  %v7317_v29 = vld [vmem:[#allocation27_spill] sm:$0xff]  ;;  %v7318_v30 = vld [vmem:[#allocation28_spill] sm:$0xff]  ;;  %s5830_s17 = sshll.u32 (%p1261_p11), %s5940_s22, 4  ;;  %s5831_s17 = int_to_ptr.vmem [resolvable:$false] %s5830_s17 }
 0x29c   : >> { %5363 = vmatmul.mubr.msk.f32.vlgmr.msra.gmra.mxu1 %vm1755_vm4, %v6436_v60  ;;  %5371 = vmatprep.subr.mxu1 %v7239_v35  ;;  %v7319_v31 = vld [vmem:[#allocation29_spill] sm:$0xff]  ;;  %v7320_v32 = vld [vmem:[#allocation30_spill] sm:$0xff]  ;;  %v7321_v33 = vld [vmem:[#allocation31_spill] sm:$0xff]  ;;  %s5832_s2 = scalar_lea.vmem (%p1261_p11), %s5831_s17, 256 }
 0x29d   : >> { %5365 = vmatprep.mubr.msk.f32.mxu1 %vm1755_vm4, %v6441_v61  ;;  %5372 = vmatpush3.msra.mxu1 %v1275_v36  ;;  %v7322_v34 = vld [vmem:[#allocation32_spill] sm:$0xff]  ;;  %v7323_v37 = vld [vmem:[#allocation33_spill] sm:$0xff]  ;;  %v7324_v38 = vld [vmem:[#allocation34_spill] sm:$0xff] }
 0x29e   : >> { %5296 = vmatmul.mubr.msk.f32.gmra.mxu0 %vm1337_vm3, %v7302_v15  ;;  %5373 = vmatprep.subr.mxu1 %v7239_v35  ;;  %v7325_v39 = vld [vmem:[#allocation35_spill] sm:$0xff]  ;;  %v7326_v40 = vld [vmem:[#allocation36_spill] sm:$0xff]  ;;  %v7327_v41 = vld [vmem:[#allocation37_spill] sm:$0xff] }
 0x29f   : >> { %5298 = vmatprep.mubr.msk.f32.mxu0 %vm1337_vm3, %v7303_v16  ;;  %5374 = vmatpush3.msra.mxu1 %v1274_v52  ;;  %v7328_v42 = vld [vmem:[#allocation38_spill] sm:$0xff]  ;;  %v7329_v43 = vld [vmem:[#allocation39_spill] sm:$0xff]  ;;  %v7330_v44 = vld [vmem:[#allocation40_spill] sm:$0xff] }
 0x2a0   : >> { %5366 = vmatmul.mubr.msk.f32.gmra.mxu1 %vm1755_vm4, %v6446_v62  ;;  %5384 = vmatprep.subr.mxu1 %v7239_v35  ;;  %v7331_v45 = vld [vmem:[#allocation41_spill] sm:$0xff]  ;;  %v7332_v46 = vld [vmem:[#allocation42_spill] sm:$0xff]  ;;  %v7333_v47 = vld [vmem:[#allocation43_spill] sm:$0xff] }
 0x2a1   : >> { %5368 = vmatprep.mubr.msk.f32.mxu1 %vm1755_vm4, %v6451_v63  ;;  %5425 = vmatprep.subr.mxu0 %v7239_v35  ;;  %v7334_v48 = vld [vmem:[#allocation44_spill] sm:$0xff]  ;;  %v6606_v53 = vld [vmem:[%s6507_s25 + $0x40] sm:$0xff]  ;;  %v7335_v49 = vld [vmem:[#allocation45_spill] sm:$0xff] }
 0x2a2   : >> { %5299 = vmatmul.mubr.msk.f32.gmra.mxu0 %vm1337_vm3, %v7304_v17  ;;  %v7336_v54 = vld [vmem:[#allocation46_spill] sm:$0xff]  ;;  %v7337_v57 = vld [vmem:[#allocation47_spill] sm:$0xff]  ;;  %v7338_v58 = vld [vmem:[#allocation48_spill] sm:$0xff] }
 0x2a3   : >> { %5301 = vmatprep.mubr.msk.f32.mxu0 %vm1337_vm3, %v7305_v18  ;;  %5426 = vmatpush3.msra.mxu0 %v6606_v53  ;;  %v7339_v2 = vld [vmem:[#allocation49_spill] sm:$0xff]  ;;  %v7340_v3 = vld [vmem:[#allocation50_spill] sm:$0xff]  ;;  %v7341_v4 = vld [vmem:[#allocation51_spill] sm:$0xff] }
 0x2a4   : >> { %5369 = vmatmul.mubr.msk.f32.gmra.mxu1 %vm1755_vm4, %v7306_v0  ;;  %5466 = vmatprep.subr.mxu0 %v7239_v35  ;;  %v7342_v5 = vld [vmem:[#allocation52_spill] sm:$0xff]  ;;  %v7343_v6 = vld [vmem:[#allocation53_spill] sm:$0xff]  ;;  %v1273_v9 = vld [vmem:[%s6507_s25 + $0x8] sm:$0xff] }
 0x2a5   : >> { %5375 = vmatprep.mubr.msk.f32.mxu1 %vm5939_vm5, %v7239_v35  ;;  %v1272_v36 = vld [vmem:[%s6507_s25] sm:$0xff]  ;;  %v1297_v16 = vld [vmem:[%s6507_s25 + $0xc8] sm:$0xff]  ;;  %v4379_v59 = vld [vmem:[%s7226_s13 + $0x18] sm:$0xff] (%p1261_p11) }
 0x2a6   : >> { %5302 = vmatmul.mubr.msk.f32.gmra.mxu0 %vm1337_vm3, %v7307_v19  ;;  %v1296_v17 = vld [vmem:[%s6507_s25 + $0xc0] sm:$0xff]  ;;  %v4377_v60 = vld [vmem:[%s7226_s13 + $0x8] sm:$0xff] (%p1261_p11)  ;;  %v4378_v61 = vld [vmem:[%s7226_s13 + $0x10] sm:$0xff] (%p1261_p11) }
 0x2a7   : >> { %5304 = vmatprep.mubr.msk.f32.mxu0 %vm1337_vm3, %v7308_v20  ;;  %v4376_v62 = vld [vmem:[%s7226_s13] sm:$0xff] (%p1261_p11) }
 0x2aa   : >> { %5305 = vmatmul.mubr.msk.f32.gmra.mxu0 %vm1337_vm3, %v7309_v21 }
 0x2ab   : >> { %5307 = vmatprep.mubr.msk.f32.mxu0 %vm1337_vm3, %v7310_v22 }
 0x2ae   : >> { %5308 = vmatmul.mubr.msk.f32.gmra.mxu0 %vm1337_vm3, %v7311_v23 }
 0x2af   : >> { %5310 = vmatprep.mubr.msk.f32.mxu0 %vm1337_vm3, %v7312_v24 }
 0x2b2   : >> { %5311 = vmatmul.mubr.msk.f32.gmra.mxu0 %vm1337_vm3, %v7313_v25 }
 0x2b3   : >> { %5313 = vmatprep.mubr.msk.f32.mxu0 %vm1337_vm3, %v7314_v26 }
 0x2b6   : >> { %5314 = vmatmul.mubr.msk.f32.gmra.mxu0 %vm1337_vm3, %v7315_v27 }
 0x2b7   : >> { %5316 = vmatprep.mubr.msk.f32.mxu0 %vm1337_vm3, %v7316_v28 }
 0x2ba   : >> { %5317 = vmatmul.mubr.msk.f32.gmra.mxu0 %vm1337_vm3, %v7317_v29 }
 0x2bb   : >> { %5319 = vmatprep.mubr.msk.f32.mxu0 %vm1337_vm3, %v7318_v30 }
 0x2be   : >> { %5320 = vmatmul.mubr.msk.f32.gmra.mxu0 %vm1337_vm3, %v7319_v31 }
 0x2bf   : >> { %5322 = vmatprep.mubr.msk.f32.mxu0 %vm1337_vm3, %v7320_v32 }
 0x2c2   : >> { %5323 = vmatmul.mubr.msk.f32.gmra.mxu0 %vm1337_vm3, %v7321_v33 }
 0x2c3   : >> { %5325 = vmatprep.mubr.msk.f32.mxu0 %vm1337_vm3, %v7322_v34 }
 0x2c6   : >> { %5326 = vmatmul.mubr.msk.f32.gmra.mxu0 %vm1337_vm3, %v7323_v37 }
 0x2c7   : >> { %5328 = vmatprep.mubr.msk.f32.mxu0 %vm1337_vm3, %v7324_v38 }
 0x2ca   : >> { %5329 = vmatmul.mubr.msk.f32.gmra.mxu0 %vm1337_vm3, %v7325_v39 }
 0x2cb   : >> { %5331 = vmatprep.mubr.msk.f32.mxu0 %vm1337_vm3, %v7326_v40 }
 0x2ce   : >> { %5332 = vmatmul.mubr.msk.f32.gmra.mxu0 %vm1337_vm3, %v7327_v41  ;;  %v7344_v41 = vld [vmem:[#allocation9_spill] sm:$0xff] }
 0x2cf   : >> { %5334 = vmatprep.mubr.msk.f32.mxu0 %vm1337_vm3, %v7328_v42 }
 0x2d2   : >> { %5335 = vmatmul.mubr.msk.f32.gmra.mxu0 %vm1337_vm3, %v7329_v43 }
 0x2d3   : >> { %5337 = vmatprep.mubr.msk.f32.mxu0 %vm1337_vm3, %v7330_v44 }
 0x2d6   : >> { %5338 = vmatmul.mubr.msk.f32.gmra.mxu0 %vm1337_vm3, %v7331_v45 }
 0x2d7   : >> { %5340 = vmatprep.mubr.msk.f32.mxu0 %vm1337_vm3, %v7332_v46 }
 0x2da   : >> { %5341 = vmatmul.mubr.msk.f32.gmra.mxu0 %vm1337_vm3, %v7333_v47 }
 0x2db   : >> { %5343 = vmatprep.mubr.msk.f32.mxu0 %vm1337_vm3, %v7334_v48  ;;  %v1285_v48 = vld [vmem:[%s6507_s25 + $0x68] sm:$0xff] }
 0x2de   : >> { %5344 = vmatmul.mubr.msk.f32.gmra.mxu0 %vm1337_vm3, %v7335_v49 }
 0x2df   : >> { %5346 = vmatprep.mubr.msk.f32.mxu0 %vm1337_vm3, %v7336_v54 }
 0x2e2   : >> { %5347 = vmatmul.mubr.msk.f32.gmra.mxu0 %vm1337_vm3, %v7337_v57 }
 0x2e3   : >> { %5349 = vmatprep.mubr.msk.f32.mxu0 %vm1337_vm3, %v7338_v58 }
 0x2e6   : >> { %5350 = vmatmul.mubr.msk.f32.gmra.mxu0 %vm1337_vm3, %v7339_v2 }
 0x2e7   : >> { %5352 = vmatprep.mubr.msk.f32.mxu0 %vm1337_vm3, %v7340_v3  ;;  %v1277_v3 = vld [vmem:[%s6507_s25 + $0x28] sm:$0xff] }
 0x2ea   : >> { %5353 = vmatmul.mubr.msk.f32.gmra.mxu0 %vm1337_vm3, %v7341_v4 }
 0x2eb   : >> { %5355 = vmatprep.mubr.msk.f32.mxu0 %vm1337_vm3, %v7342_v5  ;;  %v1276_v5 = vld [vmem:[%s6507_s25 + $0x20] sm:$0xff] }
 0x2ee   : >> { %5356 = vmatmul.mubr.msk.f32.gmra.mxu0 %vm1337_vm3, %v7343_v6  ;;  %v1283_v6 = vld [vmem:[%s6507_s25 + $0x58] sm:$0xff] }
 0x2ef   : >> { %5427 = vmatprep.mubr.msk.f32.mxu0 %vm5939_vm5, %v7239_v35 }
 0x35a   : >> { %v5294_v8 = vpop.f32.mrf.mxu0 }
 0x35c   : >> { %v1536_v10 = vpop.f32.mrf.mxu0 }
 0x35d   : >> { %5376 = vmatmul.mubr.msk.f32.vlgmr.msra.gmra.mxu1 %vm1755_vm4, %v1536_v10  ;;  %v1282_v10 = vld [vmem:[%s6507_s25 + $0x50] sm:$0xff] }
 0x35e   : >> { %5385 = vmatpush3.msra.mxu1 %v1273_v9  ;;  %v5297_v52 = vpop.f32.mrf.mxu0  ;;  %5378 = vmatprep.mubr.msk.f32.mxu1 %vm5939_vm5, %v7239_v35 }
 0x35f   : >> { %5386 = vmatprep.subr.mxu1 %v7239_v35 }
 0x360   : >> { %v1546_v54 = vpop.f32.mrf.mxu0  ;;  %5387 = vmatpush3.msra.mxu1 %v1272_v36 }
 0x361   : >> { %5379 = vmatmul.mubr.msk.f32.gmra.mxu1 %vm1755_vm4, %v5294_v8  ;;  %5397 = vmatprep.subr.mxu1 %v7239_v35 }
 0x362   : >> { %5381 = vmatprep.mubr.msk.f32.mxu1 %vm5939_vm5, %v7239_v35  ;;  %v5300_v57 = vpop.f32.mrf.mxu0 }
 0x364   : >> { %v1556_v58 = vpop.f32.mrf.mxu0 }
 0x365   : >> { %5382 = vmatmul.mubr.msk.f32.gmra.mxu1 %vm1755_vm4, %v1546_v54  ;;  %v1289_v54 = vld [vmem:[%s6507_s25 + $0x88] sm:$0xff] }
 0x366   : >> { %5388 = vmatprep.mubr.msk.f32.mxu1 %vm5939_vm5, %v7239_v35  ;;  %v6643_v2 = vpop.f32.mrf.mxu0 }
 0x368   : >> { %v1566_v4 = vpop.f32.mrf.mxu0 }
 0x369   : >> { %5389 = vmatmul.mubr.msk.f32.vlgmr.msra.gmra.mxu1 %vm1755_vm4, %v5930_v7 }
 0x36a   : >> { %5398 = vmatpush3.msra.mxu1 %v1277_v3  ;;  %5391 = vmatprep.mubr.msk.f32.mxu1 %vm5939_vm5, %v7239_v35  ;;  %v5306_v8 = vpop.f32.mrf.mxu0 }
 0x36b   : >> { %5399 = vmatprep.subr.mxu1 %v7239_v35  ;;  %5428 = vmatmul.mubr.msk.f32.vlgmr.msra.gmra.mxu0 %vm1755_vm4, %v5306_v8 }
 0x36c   : >> { %5400 = vmatpush3.msra.mxu1 %v1276_v5  ;;  %v1576_v9 = vpop.f32.mrf.mxu0  ;;  %5467 = vmatpush3.msra.mxu0 %v1283_v6  ;;  %v1279_v6 = vld [vmem:[%s6507_s25 + $0x38] sm:$0xff] }
 0x36d   : >> { %5392 = vmatmul.mubr.msk.f32.gmra.mxu1 %vm1755_vm4, %v5926_v11  ;;  %5410 = vmatprep.subr.mxu1 %v7239_v35 }
 0x36e   : >> { %5394 = vmatprep.mubr.msk.f32.mxu1 %vm5939_vm5, %v7239_v35  ;;  %v5309_v36 = vpop.f32.mrf.mxu0  ;;  %5468 = vmatprep.subr.mxu0 %v7239_v35 }
 0x36f   : >> { %5469 = vmatpush3.msra.mxu0 %v1282_v10  ;;  %5470 = vmatprep.mubr.msk.f32.mxu0 %vm5939_vm5, %v7239_v35  ;;  %v1278_v10 = vld [vmem:[%s6507_s25 + $0x30] sm:$0xff] }
 0x370   : >> { %v1586_v3 = vpop.f32.mrf.mxu0  ;;  %5471 = vmatmul.mubr.msk.f32.vlgmr.msra.gmra.mxu0 %vm1755_vm4, %v5930_v7  ;;  %5492 = vmatprep.subr.mxu0 %v7239_v35  ;;  %v1288_v7 = vld [vmem:[%s6507_s25 + $0x80] sm:$0xff] }
 0x371   : >> { %5395 = vmatmul.mubr.msk.f32.gmra.mxu1 %vm1755_vm4, %v5922_v55  ;;  %5473 = vmatprep.mubr.msk.f32.mxu0 %vm5939_vm5, %v7239_v35 }
 0x372   : >> { %5401 = vmatprep.mubr.msk.f32.mxu1 %vm5939_vm5, %v7239_v35  ;;  %v6673_v5 = vpop.f32.mrf.mxu0  ;;  %5493 = vmatpush3.msra.mxu0 %v1289_v54 }
 0x373   : >> { %5494 = vmatprep.subr.mxu0 %v7239_v35 }
 0x374   : >> { %v6677_v8 = vpop.f32.mrf.mxu0  ;;  %5474 = vmatmul.mubr.msk.f32.gmra.mxu0 %vm1755_vm4, %v5926_v11 }
 0x375   : >> { %5402 = vmatmul.mubr.msk.f32.vlgmr.msra.gmra.mxu1 %vm1755_vm4, %v5297_v52  ;;  %5476 = vmatprep.mubr.msk.f32.mxu0 %vm5939_vm5, %v7239_v35 }
 0x376   : >> { %5411 = vmatpush3.msra.mxu1 %v1279_v6  ;;  %5404 = vmatprep.mubr.msk.f32.mxu1 %vm5939_vm5, %v7239_v35  ;;  %v6688_v54 = vpop.f32.mrf.mxu0 }
 0x377   : >> { %5412 = vmatprep.subr.mxu1 %v7239_v35  ;;  %5495 = vmatpush3.msra.mxu0 %v1288_v7 }
 0x378   : >> { %5413 = vmatpush3.msra.mxu1 %v1278_v10  ;;  %v6691_v0 = vpop.f32.mrf.mxu0  ;;  %5477 = vmatmul.mubr.msk.f32.gmra.mxu0 %vm1755_vm4, %v5922_v55  ;;  %v1293_v10 = vld [vmem:[%s6507_s25 + $0xa8] sm:$0xff] }
 0x379   : >> { %5405 = vmatmul.mubr.msk.f32.gmra.mxu1 %vm1755_vm4, %v1556_v58  ;;  %5731 = vmatprep.subr.mxu1 %v7239_v35 }
 0x37a   : >> { %5407 = vmatprep.mubr.msk.f32.mxu1 %vm5939_vm5, %v7239_v35  ;;  %v6699_v11 = vpop.f32.mrf.mxu0  ;;  %5496 = vmatprep.mubr.msk.f32.mxu0 %vm5939_vm5, %v7239_v35 }
 0x37b   : >> { %5518 = vmatprep.subr.mxu0 %v7239_v35 }
 0x37c   : >> { %v6704_v52 = vpop.f32.mrf.mxu0 }
 0x37d   : >> { %5408 = vmatmul.mubr.msk.f32.gmra.mxu1 %vm1755_vm4, %v5300_v57 }
 0x37e   : >> { %5414 = vmatprep.mubr.msk.f32.mxu1 %vm5939_vm5, %v7239_v35  ;;  %v6709_v55 = vpop.f32.mrf.mxu0 }
 0x380   : >> { %v6711_v58 = vpop.f32.mrf.mxu0 }
 0x381   : >> { %5415 = vmatmul.mubr.msk.f32.vlgmr.msra.gmra.mxu1 %vm1755_vm4, %v1566_v4 }
 0x382   : >> { %5733 = vmatpush3.msra.mxu1 %v6512_v1  ;;  %5417 = vmatprep.mubr.msk.f32.mxu1 %vm5939_vm5, %v7239_v35  ;;  %v6717_v6 = vpop.f32.mrf.mxu0 }
 0x383   : >> { %5732 = vmatprep.subr.mxu1 %v7239_v35 }
 0x384   : >> { %5734 = vmatpush3.msra.mxu1 %v6606_v53  ;;  %v6721_v57 = vpop.f32.mrf.mxu0 }
 0x385   : >> { %5418 = vmatmul.mubr.msk.f32.gmra.mxu1 %vm1755_vm4, %v6643_v2  ;;  %5436 = vmatprep.subr.mxu1 %v7239_v35 }
 0x386   : >> { %5420 = vmatprep.mubr.msk.f32.mxu1 %vm5939_vm5, %v7239_v35  ;;  %v6728_v1 = vpop.f32.mrf.mxu0 }
 0x388   : >> { %v6730_v4 = vpop.f32.mrf.mxu0 }
 0x389   : >> { %5421 = vmatmul.mubr.msk.f32.gmra.mxu1 %vm1755_vm4, %v1576_v9  ;;  %v1292_v9 = vld [vmem:[%s6507_s25 + $0xa0] sm:$0xff] }
 0x38a   : >> { %5430 = vmatprep.mubr.msk.f32.mxu1 %vm5939_vm5, %v7239_v35  ;;  %v6735_v53 = vpop.f32.mrf.mxu0 }
 0x38c   : >> { %v6737_v7 = vpop.f32.mrf.mxu0 }
 0x38d   : >> { %5431 = vmatmul.mubr.msk.f32.vlgmr.msra.gmra.mxu1 %vm1755_vm4, %v1586_v3 }
 0x38e   : >> { %5433 = vmatprep.mubr.msk.f32.mxu1 %vm5939_vm5, %v7239_v35  ;;  %v5333_v2 = vpop.f32.mrf.mxu0 }
 0x390   : >> { %v1666_v12 = vpop.f32.mrf.mxu0 }
 0x391   : >> { %5434 = vmatmul.mubr.msk.f32.gmra.mxu1 %vm1755_vm4, %v5309_v36  ;;  %5497 = vmatmul.mubr.msk.f32.vlgmr.msra.gmra.mxu0 %vm1755_vm4, %v1666_v12  ;;  %v5364_v12 = vpop.f32.mrf.mxu1 }
 0x392   : >> { %5499 = vmatprep.mubr.msk.f32.mxu0 %vm5939_vm5, %v7239_v35  ;;  %v6748_v13 = vpop.f32.mrf.mxu0  ;;  %5519 = vmatpush3.msra.mxu0 %v1293_v10 }
 0x393   : >> { %5520 = vmatprep.subr.mxu0 %v7239_v35  ;;  %5444 = vmatprep.mubr.msk.f32.mxu1 %vm5939_vm5, %v7239_v35  ;;  %v1840_v3 = vpop.f32.mrf.mxu1 }
 0x394   : >> { %5521 = vmatpush3.msra.mxu0 %v1292_v9  ;;  %v1676_v36 = vpop.f32.mrf.mxu0 }
 0x395   : >> { %5500 = vmatmul.mubr.msk.f32.gmra.mxu0 %vm1755_vm4, %v5333_v2  ;;  %5544 = vmatprep.subr.mxu0 %v7239_v35  ;;  %v6763_v2 = vpop.f32.mrf.mxu1 }
 0x396   : >> { %5502 = vmatprep.mubr.msk.f32.mxu0 %vm5939_vm5, %v7239_v35  ;;  %v6768_v9 = vpop.f32.mrf.mxu0 }
 0x397   : >> { %v1850_v10 = vpop.f32.mrf.mxu1 }
 0x399   : >> { %5503 = vmatmul.mubr.msk.f32.gmra.mxu0 %vm1755_vm4, %v1676_v36  ;;  %v6771_v36 = vpop.f32.mrf.mxu0 }
 0x39a   : >> { %5522 = vmatprep.mubr.msk.f32.mxu0 %vm5939_vm5, %v7239_v35 }
 0x39d   : >> { %5523 = vmatmul.mubr.msk.f32.vlgmr.msra.gmra.mxu0 %vm1755_vm4, %v1840_v3  ;;  %v6775_v3 = vpop.f32.mrf.mxu0 }
 0x39e   : >> { %5525 = vmatprep.mubr.msk.f32.mxu0 %vm5939_vm5, %v7239_v35  ;;  %5545 = vmatpush3.msra.mxu0 %v1297_v16 }
 0x39f   : >> { %v6777_v14 = vpop.f32.mrf.mxu0  ;;  %5546 = vmatprep.subr.mxu0 %v7239_v35 }
 0x3a0   : >> { %5547 = vmatpush3.msra.mxu0 %v1296_v17  ;;  %v1301_v17 = vld [vmem:[%s6507_s25 + $0xe8] sm:$0xff] }
 0x3a1   : >> { %5526 = vmatmul.mubr.msk.f32.gmra.mxu0 %vm1755_vm4, %v5364_v12  ;;  %v5345_v15 = vpop.f32.mrf.mxu0  ;;  %5570 = vmatprep.subr.mxu0 %v7239_v35 }
 0x3a2   : >> { %5528 = vmatprep.mubr.msk.f32.mxu0 %vm5939_vm5, %v7239_v35 }
 0x3a3   : >> { %v6781_v12 = vpop.f32.mrf.mxu0 }
 0x3a5   : >> { %5529 = vmatmul.mubr.msk.f32.gmra.mxu0 %vm1755_vm4, %v1850_v10  ;;  %v5348_v10 = vpop.f32.mrf.mxu0 }
 0x3a6   : >> { %5548 = vmatprep.mubr.msk.f32.mxu0 %vm5939_vm5, %v7239_v35 }
 0x3a7   : >> { %v1716_v18 = vpop.f32.mrf.mxu0 }
 0x3a9   : >> { %5549 = vmatmul.mubr.msk.f32.vlgmr.msra.gmra.mxu0 %vm1755_vm4, %v5345_v15  ;;  %v6789_v16 = vpop.f32.mrf.mxu0 }
 0x3aa   : >> { %5551 = vmatprep.mubr.msk.f32.mxu0 %vm5939_vm5, %v7239_v35  ;;  %5571 = vmatpush3.msra.mxu0 %v1301_v17  ;;  %v1321_v17 = vld [vmem:[%s6812_s27 + $0x10] sm:$0xff] }
 0x3ab   : >> { %v6793_v19 = vpop.f32.mrf.mxu0  ;;  %5572 = vmatprep.subr.mxu0 %v7239_v35 }
 0x3ad   : >> { %5552 = vmatmul.mubr.msk.f32.gmra.mxu0 %vm1755_vm4, %v1716_v18  ;;  %v5354_v15 = vpop.f32.mrf.mxu0  ;;  %v1300_v18 = vld [vmem:[%s6507_s25 + $0xe0] sm:$0xff] }
 0x3ae   : >> { %5554 = vmatprep.mubr.msk.f32.mxu0 %vm5939_vm5, %v7239_v35  ;;  %5573 = vmatpush3.msra.mxu0 %v1300_v18  ;;  %v1320_v18 = vld [vmem:[%s6812_s27 + $0x8] sm:$0xff] }
 0x3af   : >> { %v6800_v20 = vpop.f32.mrf.mxu0  ;;  %5596 = vmatprep.subr.mxu0 %v7239_v35 }
 0x3b1   : >> { %5555 = vmatmul.mubr.msk.f32.gmra.mxu0 %vm1755_vm4, %v5348_v10  ;;  %v5357_v21 = vpop.f32.mrf.mxu0 }
 0x3b2   : >> { %5574 = vmatprep.mubr.msk.f32.mxu0 %vm5939_vm5, %v7239_v35 }
 0x3b3   : >> { %v1746_v10 = vpop.f32.mrf.mxu0 }
 0x3b5   : >> { %5575 = vmatmul.mubr.msk.f32.vlgmr.msra.gmra.mxu0 %vm1755_vm4, %v5354_v15  ;;  %v1322_v15 = vld [vmem:[%s6812_s27 + $0x18] sm:$0xff] }
 0x3b6   : >> { %5577 = vmatprep.mubr.msk.f32.mxu0 %vm5939_vm5, %v7239_v35  ;;  %5437 = vmatpush3.msra.mxu1 %v1322_v15  ;;  %v6827_v15 = vpop.f32.mrf.mxu1 }
 0x3b7   : >> { %5438 = vmatprep.subr.mxu1 %v7239_v35 }
 0x3b8   : >> { %5439 = vmatpush3.msra.mxu1 %v1321_v17  ;;  %v6829_v22 = vpop.f32.mrf.mxu1 }
 0x3b9   : >> { %5578 = vmatmul.mubr.msk.f32.gmra.mxu0 %vm1755_vm4, %v1746_v10  ;;  %5440 = vmatprep.subr.mxu1 %v7239_v35  ;;  %v1319_v10 = vld [vmem:[%s6812_s27] sm:$0xff] }
 0x3ba   : >> { %5580 = vmatprep.mubr.msk.f32.mxu0 %vm5939_vm5, %v7239_v35  ;;  %5441 = vmatpush3.msra.mxu1 %v1320_v18 }
 0x3bb   : >> { %5442 = vmatprep.subr.mxu1 %v7239_v35 }
 0x3bc   : >> { %5443 = vmatpush3.msra.mxu1 %v1319_v10 }
 0x3bd   : >> { %5581 = vmatmul.mubr.msk.f32.gmra.mxu0 %vm1755_vm4, %v5357_v21  ;;  %5453 = vmatprep.subr.mxu1 %v7239_v35 }
 0x3be   : >> { %5604 = vmatprep.mubr.msk.f32.mxu0 %vm5939_vm5, %v7239_v35 }
 0x41d   : >> { %v1944_v21 = vpop.f32.mrf.mxu1 }
 0x41f   : >> { %v5377_v23 = vpop.f32.mrf.mxu1 }
 0x421   : >> { %v1949_v17 = vpop.f32.mrf.mxu1 }
 0x423   : >> { %v5380_v24 = vpop.f32.mrf.mxu1 }
 0x425   : >> { %v1954_v25 = vpop.f32.mrf.mxu1 }
 0x427   : >> { %v5383_v26 = vpop.f32.mrf.mxu1 }
 0x429   : >> { %v2033_v27 = vpop.f32.mrf.mxu1 }
 0x42b   : >> { %v5390_v28 = vpop.f32.mrf.mxu1  ;;  %v2306_v18 = vpop.f32.mrf.mxu0 }
 0x42d   : >> { %v2038_v29 = vpop.f32.mrf.mxu1  ;;  %v5429_v30 = vpop.f32.mrf.mxu0 }
 0x42e   : >> { %v2039_v46 = vadd.f32 %v2038_v29, %v1949_v17 }
 0x42f   : >> { %v5393_v10 = vpop.f32.mrf.mxu1 }
 0x430   : >> { %v6831_v31 = vpop.f32.mrf.mxu0  ;;  %v6843_v10 = vld [vmem:[%s1315_s0] sm:$0xff]  ;;  %s4704_s0 = sshll.u32 (%p1261_p11), %s487_s24, 4  ;;  %s4705_s0 = int_to_ptr.vmem [resolvable:$true] %s4704_s0 }
 0x431   : >> { %v2043_v35 = vpop.f32.mrf.mxu1  ;;  %v2326_v42 = vrot.slane %v6843_v10, %v7344_v41  ;;  %s5826_s26 = scalar_lea.vmem (%p1261_p11), %s4705_s0, 128  ;;  %p5833_p1 = scmp.lt.s32.totalorder (%p1261_p11), %s4705_s0, %s5831_s17 }
 0x432   : >> { %v5472_v32 = vpop.f32.mrf.mxu0  ;;  %p5827_p12 = scmp.ne.s32.totalorder (%p1261_p11), %s4705_s0, %s5826_s26  ;;  %p5834_p2 = scmp.lt.s32.totalorder (%p1261_p11), %s5832_s2, %s5826_s26 }
 0x433   : >> { %v5396_v33 = vpop.f32.mrf.mxu1  ;;  %v2034_v32 = vadd.f32 %v2033_v27, %v1944_v21  ;;  %v1284_v21 = vld [vmem:[%s6507_s25 + $0x60] sm:$0xff] }
 0x434   : >> { %v6833_v34 = vpop.f32.mrf.mxu0  ;;  %p5828_p13 = pnand (%p1261_p11), %p5827_p12, %p6059_p5  ;;  %p5835_p3 = por (%p1261_p11), %p5834_p2, %p5833_p1 }
 0x435   : >> { %v2122_v23 = vpop.f32.mrf.mxu1 }
 0x436   : >> { %v5475_v37 = vpop.f32.mrf.mxu0  ;;  %p5829_p0 = pneg (%p1261_p11), %p5828_p13 }
 0x437   : >> { %v5403_v24 = vpop.f32.mrf.mxu1  ;;  %v2136_v37 = vadd.f32 %v2122_v23, %v2034_v32  ;;  %v7345_v23 = vmov 0.0   ;;  %v2044_v32 = vadd.f32 %v2043_v35, %v1954_v25 }
 0x438   : >> { %v6835_v38 = vpop.f32.mrf.mxu0  ;;  %p5836_p4 = pnand (%p1261_p11), %p5835_p3, %p5829_p0 }
 0x439   : >> { %v2127_v26 = vpop.f32.mrf.mxu1 }
 0x43a   : >> { %v5478_v28 = vpop.f32.mrf.mxu0  ;;  %v2137_v27 = vadd.f32 %v2127_v26, %v2039_v46 }
 0x43b   : >> { %v5406_v39 = vpop.f32.mrf.mxu1 }
 0x43d   : >> { %v2132_v30 = vpop.f32.mrf.mxu1 }
 0x43f   : >> { %v5409_v33 = vpop.f32.mrf.mxu1 }
 0x441   : >> { %v2214_v24 = vpop.f32.mrf.mxu1 }
 0x442   : >> { %v2228_v40 = vadd.f32 %v2214_v24, %v2136_v37 }
 0x443   : >> { %v5416_v28 = vpop.f32.mrf.mxu1 }
 0x444   : >> { %v2320_v39 = vadd.f32 %v2306_v18, %v2228_v40 }
 0x445   : >> { %v2219_v43 = vpop.f32.mrf.mxu1 }
 0x446   : >> { %v2327_v44 = vadd.f32 %v2326_v42, %v2320_v39  ;;  %v2229_v37 = vadd.f32 %v2219_v43, %v2137_v27  ;;  %v1287_v39 = vld [vmem:[%s6507_s25 + $0x78] sm:$0xff] }
 0x447   : >> { %v5419_v45 = vpop.f32.mrf.mxu1 }
 0x448   : >> { %v2330_v47 = vmax.f32 %v2327_v44, 0.0  ;;  %v2138_v45 = vadd.f32 %v2132_v30, %v2044_v32 }
 0x449   : >> { %v2224_v49 = vpop.f32.mrf.mxu1 }
 0x44a   : >> { %5445 = vmatmul.mubr.msk.f32.vlgmr.msra.gmra.mxu1 %vm507_vm0, %v2330_v47  ;;  %v2230_v46 = vadd.f32 %v2224_v49, %v2138_v45 }
 0x44b   : >> { %v5422_v33 = vpop.f32.mrf.mxu1  ;;  %5454 = vmatpush3.msra.mxu1 %v1285_v48  ;;  %5447 = vmatprep.mubr.msk.f32.mxu1 %vm5939_vm5, %v7345_v23 }
 0x44c   : >> { %5455 = vmatprep.subr.mxu1 %v7345_v23 }
 0x44d   : >> { %v2311_v40 = vpop.f32.mrf.mxu1  ;;  %5456 = vmatpush3.msra.mxu1 %v1284_v21 }
 0x44e   : >> { %v2321_v29 = vadd.f32 %v2311_v40, %v2229_v37  ;;  %5479 = vmatprep.subr.mxu1 %v7345_v23  ;;  %v1291_v40 = vld [vmem:[%s6507_s25 + $0x98] sm:$0xff] }
 0x44f   : >> { %v5432_v44 = vpop.f32.mrf.mxu1 }
 0x450   : >> { %v2328_v17 = vadd.f32 %v2326_v42, %v2321_v29 }
 0x451   : >> { %v2316_v47 = vpop.f32.mrf.mxu1  ;;  %v6854_v18 = vpop.f32.mrf.mxu0 }
 0x452   : >> { %v2331_v48 = vmax.f32 %v2328_v17, 0.0  ;;  %v2322_v26 = vadd.f32 %v2316_v47, %v2230_v46  ;;  %v1299_v47 = vld [vmem:[%s6507_s25 + $0xd8] sm:$0xff] }
 0x453   : >> { %v5435_v25 = vpop.f32.mrf.mxu1  ;;  %v5498_v43 = vpop.f32.mrf.mxu0 }
 0x454   : >> { %v2329_v35 = vadd.f32 %v2326_v42, %v2322_v26  ;;  %5448 = vmatmul.mubr.msk.f32.gmra.mxu1 %vm507_vm0, %v2331_v48  ;;  %v1286_v42 = vld [vmem:[%s6507_s25 + $0x70] sm:$0xff]  ;;  %v1303_v43 = vld [vmem:[%s6507_s25 + $0xf8] sm:$0xff] }
 0x455   : >> { %5450 = vmatprep.mubr.msk.f32.mxu1 %vm5939_vm5, %v7345_v23  ;;  %v6859_v30 = vpop.f32.mrf.mxu0 }
 0x456   : >> { %v2332_v24 = vmax.f32 %v2329_v35, 0.0  ;;  %v1307_v35 = vld [vmem:[%s6507_s25 + $0x118] sm:$0xff] }
 0x457   : >> { %v5501_v49 = vpop.f32.mrf.mxu0 }
 0x458   : >> { %5451 = vmatmul.mubr.msk.f32.gmra.mxu1 %vm507_vm0, %v2332_v24 }
 0x459   : >> { %5457 = vmatprep.mubr.msk.f32.mxu1 %vm5939_vm5, %v7345_v23  ;;  %v6864_v28 = vpop.f32.mrf.mxu0 }
 0x45b   : >> { %v5504_v27 = vpop.f32.mrf.mxu0 }
 0x45c   : >> { %5458 = vmatmul.mubr.msk.f32.vlgmr.msra.gmra.mxu1 %vm1755_vm4, %v6721_v57 }
 0x45d   : >> { %5480 = vmatpush3.msra.mxu1 %v1287_v39  ;;  %5460 = vmatprep.mubr.msk.f32.mxu1 %vm5939_vm5, %v7345_v23  ;;  %v6872_v21 = vpop.f32.mrf.mxu0 }
 0x45e   : >> { %5481 = vmatprep.subr.mxu1 %v7345_v23 }
 0x45f   : >> { %5482 = vmatpush3.msra.mxu1 %v1286_v42  ;;  %v5524_v33 = vpop.f32.mrf.mxu0 }
 0x460   : >> { %5461 = vmatmul.mubr.msk.f32.gmra.mxu1 %vm1755_vm4, %v6717_v6  ;;  %5505 = vmatprep.subr.mxu1 %v7345_v23  ;;  %v1290_v6 = vld [vmem:[%s6507_s25 + $0x90] sm:$0xff] }
 0x461   : >> { %5463 = vmatprep.mubr.msk.f32.mxu1 %vm5939_vm5, %v7345_v23  ;;  %v6880_v57 = vpop.f32.mrf.mxu0 }
 0x463   : >> { %v5527_v32 = vpop.f32.mrf.mxu0 }
 0x464   : >> { %5464 = vmatmul.mubr.msk.f32.gmra.mxu1 %vm1755_vm4, %v6730_v4  ;;  %v1295_v4 = vld [vmem:[%s6507_s25 + $0xb8] sm:$0xff] }
 0x465   : >> { %5483 = vmatprep.mubr.msk.f32.mxu1 %vm5939_vm5, %v7345_v23  ;;  %v6886_v37 = vpop.f32.mrf.mxu0 }
 0x467   : >> { %v5530_v45 = vpop.f32.mrf.mxu0 }
 0x468   : >> { %5484 = vmatmul.mubr.msk.f32.vlgmr.msra.gmra.mxu1 %vm1755_vm4, %v6728_v1 }
 0x469   : >> { %5506 = vmatpush3.msra.mxu1 %v1291_v40  ;;  %5486 = vmatprep.mubr.msk.f32.mxu1 %vm5939_vm5, %v7345_v23  ;;  %v6902_v1 = vpop.f32.mrf.mxu0 }
 0x46a   : >> { %5507 = vmatprep.subr.mxu1 %v7345_v23 }
 0x46b   : >> { %5508 = vmatpush3.msra.mxu1 %v1290_v6  ;;  %v5550_v29 = vpop.f32.mrf.mxu0 }
 0x46c   : >> { %5487 = vmatmul.mubr.msk.f32.gmra.mxu1 %vm1755_vm4, %v6737_v7  ;;  %5531 = vmatprep.subr.mxu1 %v7345_v23  ;;  %v1294_v7 = vld [vmem:[%s6507_s25 + $0xb0] sm:$0xff] }
 0x46d   : >> { %5489 = vmatprep.mubr.msk.f32.mxu1 %vm5939_vm5, %v7345_v23  ;;  %v6910_v44 = vpop.f32.mrf.mxu0 }
 0x470   : >> { %5490 = vmatmul.mubr.msk.f32.gmra.mxu1 %vm1755_vm4, %v6735_v53  ;;  %v5553_v53 = vpop.f32.mrf.mxu0 }
 0x471   : >> { %5509 = vmatprep.mubr.msk.f32.mxu1 %vm5939_vm5, %v7345_v23 }
 0x472   : >> { %v6918_v46 = vpop.f32.mrf.mxu0 }
 0x474   : >> { %5510 = vmatmul.mubr.msk.f32.vlgmr.msra.gmra.mxu1 %vm1755_vm4, %v6748_v13  ;;  %v5556_v13 = vpop.f32.mrf.mxu0 }
 0x475   : >> { %5532 = vmatpush3.msra.mxu1 %v1295_v4  ;;  %5512 = vmatprep.mubr.msk.f32.mxu1 %vm5939_vm5, %v7345_v23 }
 0x476   : >> { %5533 = vmatprep.subr.mxu1 %v7345_v23  ;;  %v6924_v17 = vpop.f32.mrf.mxu0 }
 0x477   : >> { %5534 = vmatpush3.msra.mxu1 %v1294_v7 }
 0x478   : >> { %5513 = vmatmul.mubr.msk.f32.gmra.mxu1 %vm1755_vm4, %v6771_v36  ;;  %5557 = vmatprep.subr.mxu1 %v7345_v23  ;;  %v5576_v48 = vpop.f32.mrf.mxu0  ;;  %v1298_v36 = vld [vmem:[%s6507_s25 + $0xd0] sm:$0xff] }
 0x479   : >> { %5515 = vmatprep.mubr.msk.f32.mxu1 %vm5939_vm5, %v7345_v23 }
 0x47a   : >> { %v6932_v26 = vpop.f32.mrf.mxu0 }
 0x47c   : >> { %5516 = vmatmul.mubr.msk.f32.gmra.mxu1 %vm1755_vm4, %v6768_v9  ;;  %v5579_v9 = vpop.f32.mrf.mxu0 }
 0x47d   : >> { %5535 = vmatprep.mubr.msk.f32.mxu1 %vm5939_vm5, %v7345_v23 }
 0x47e   : >> { %v6940_v25 = vpop.f32.mrf.mxu0 }
 0x480   : >> { %5536 = vmatmul.mubr.msk.f32.vlgmr.msra.gmra.mxu1 %vm1755_vm4, %v6777_v14  ;;  %v5582_v14 = vpop.f32.mrf.mxu0 }
 0x481   : >> { %5558 = vmatpush3.msra.mxu1 %v1299_v47  ;;  %5538 = vmatprep.mubr.msk.f32.mxu1 %vm5939_vm5, %v7345_v23 }
 0x482   : >> { %5559 = vmatprep.subr.mxu1 %v7345_v23 }
 0x483   : >> { %5560 = vmatpush3.msra.mxu1 %v1298_v36 }
 0x484   : >> { %5539 = vmatmul.mubr.msk.f32.gmra.mxu1 %vm1755_vm4, %v6775_v3  ;;  %5583 = vmatprep.subr.mxu1 %v7345_v23  ;;  %v1302_v3 = vld [vmem:[%s6507_s25 + $0xf0] sm:$0xff] }
 0x485   : >> { %5541 = vmatprep.mubr.msk.f32.mxu1 %vm5939_vm5, %v7345_v23 }
 0x488   : >> { %5542 = vmatmul.mubr.msk.f32.gmra.mxu1 %vm1755_vm4, %v6781_v12  ;;  %v1305_v12 = vld [vmem:[%s6507_s25 + $0x108] sm:$0xff] }
 0x489   : >> { %5561 = vmatprep.mubr.msk.f32.mxu1 %vm5939_vm5, %v7345_v23 }
 0x48c   : >> { %5562 = vmatmul.mubr.msk.f32.vlgmr.msra.gmra.mxu1 %vm1755_vm4, %v6793_v19  ;;  %v1306_v19 = vld [vmem:[%s6507_s25 + $0x110] sm:$0xff] }
 0x48d   : >> { %5584 = vmatpush3.msra.mxu1 %v1303_v43  ;;  %5564 = vmatprep.mubr.msk.f32.mxu1 %vm5939_vm5, %v7345_v23 }
 0x48e   : >> { %5585 = vmatprep.subr.mxu1 %v7345_v23 }
 0x48f   : >> { %5586 = vmatpush3.msra.mxu1 %v1302_v3 }
 0x490   : >> { %5565 = vmatmul.mubr.msk.f32.gmra.mxu1 %vm1755_vm4, %v6789_v16  ;;  %5613 = vmatprep.subr.mxu1 %v1307_v35 }
 0x491   : >> { %5567 = vmatprep.mubr.msk.f32.mxu1 %vm5939_vm5, %v7345_v23 }
 0x494   : >> { %5568 = vmatmul.mubr.msk.f32.gmra.mxu1 %vm1755_vm4, %v6800_v20  ;;  %v1304_v20 = vld [vmem:[%s6507_s25 + $0x100] sm:$0xff] }
 0x495   : >> { %5587 = vmatprep.mubr.msk.f32.mxu1 %vm5939_vm5, %v7345_v23 }
 0x498   : >> { %5588 = vmatmul.mubr.msk.f32.vlgmr.msra.gmra.mxu1 %vm1755_vm4, %v6763_v2  ;;  %v1310_v2 = vld [vmem:[%s6507_s25 + $0x130] sm:$0xff] }
 0x499   : >> { %5590 = vmatprep.mubr.msk.f32.mxu1 %vm5939_vm5, %v7345_v23  ;;  %5614 = vmatpush3.msra.mxu1 %v1307_v35 }
 0x49a   : >> { %5615 = vmatprep.subr.mxu1 %v1306_v19 }
 0x49b   : >> { %5616 = vmatpush3.msra.mxu1 %v1306_v19 }
 0x49c   : >> { %5591 = vmatmul.mubr.msk.f32.gmra.mxu1 %vm1755_vm4, %v6829_v22  ;;  %5620 = vmatprep.subr.mxu1 %v1305_v12  ;;  %v1311_v22 = vld [vmem:[%s6507_s25 + $0x138] sm:$0xff] }
 0x49d   : >> { %5593 = vmatprep.mubr.msk.f32.mxu1 %vm5939_vm5, %v7345_v23 }
 0x4a0   : >> { %5594 = vmatmul.mubr.msk.f32.gmra.mxu1 %vm1755_vm4, %v6827_v15 }
 0x4a1   : >> { %5617 = vmatprep.mubr.msk.f32.mxu1 %vm1755_vm4, %v6691_v0  ;;  %v1326_v0 = vld [vmem:[%s6812_s27 + $0x38] sm:$0xff] }
 0x4a2   : >> { %5597 = vmatpush3.msra.mxu0 %v1326_v0 }
 0x4a3   : >> { %5598 = vmatprep.subr.mxu0 %v7345_v23 }
 0x4a4   : >> { %5618 = vmatmul.mubr.msk.f32.vlgmr.msra.gmra.mxu1 %vm1755_vm4, %v6688_v54  ;;  %v1323_v54 = vld [vmem:[%s6812_s27 + $0x20] sm:$0xff] }
 0x4a5   : >> { %5621 = vmatpush3.msra.mxu1 %v1305_v12  ;;  %5624 = vmatprep.mubr.msk.f32.mxu1 %vm1755_vm4, %v6677_v8  ;;  %v1325_v8 = vld [vmem:[%s6812_s27 + $0x30] sm:$0xff] }
 0x4a6   : >> { %5622 = vmatprep.subr.mxu1 %v1304_v20  ;;  %5599 = vmatpush3.msra.mxu0 %v1325_v8 }
 0x4a7   : >> { %5623 = vmatpush3.msra.mxu1 %v1304_v20  ;;  %5600 = vmatprep.subr.mxu0 %v7345_v23 }
 0x4a8   : >> { %5625 = vmatmul.mubr.msk.f32.vlgmr.msra.gmra.mxu1 %vm1755_vm4, %v6673_v5  ;;  %5634 = vmatprep.subr.mxu1 %v1311_v22  ;;  %v1324_v5 = vld [vmem:[%s6812_s27 + $0x28] sm:$0xff] }
 0x4a9   : >> { %5635 = vmatpush3.msra.mxu1 %v1311_v22  ;;  %5638 = vmatprep.mubr.msk.f32.mxu1 %vm1755_vm4, %v6711_v58  ;;  %v6999_v58 = vld [vmem:[%s6507_s25 + $0x128] sm:$0xff] }
 0x4aa   : >> { %5636 = vmatprep.subr.mxu1 %v1310_v2  ;;  %5601 = vmatpush3.msra.mxu0 %v1324_v5 }
 0x4ab   : >> { %5637 = vmatpush3.msra.mxu1 %v1310_v2  ;;  %5602 = vmatprep.subr.mxu0 %v7345_v23 }
 0x4ac   : >> { %5639 = vmatmul.mubr.msk.f32.vlgmr.msra.gmra.mxu1 %vm1755_vm4, %v6709_v55  ;;  %5603 = vmatpush3.msra.mxu0 %v1323_v54 }
 0x4ad   : >> { %5627 = vmatprep.subr.mxu0 %v6999_v58 }
 0x50a   : >> { %v7002_v16 = vpop.f32.mrf.mxu1 }
 0x50c   : >> { %v5446_v55 = vpop.f32.mrf.mxu1 }
 0x514   : >> { %v7004_v15 = vpop.f32.mrf.mxu1 }
 0x516   : >> { %v5449_v24 = vpop.f32.mrf.mxu1 }
 0x518   : >> { %v7006_v49 = vpop.f32.mrf.mxu1 }
 0x51a   : >> { %v5452_v39 = vpop.f32.mrf.mxu1 }
 0x51c   : >> { %v2504_v27 = vpop.f32.mrf.mxu1 }
 0x51d   : >> { %v2585_v3 = vadd.f32 %v6831_v31, %v2504_v27 }
 0x51e   : >> { %v5459_v42 = vpop.f32.mrf.mxu1 }
 0x520   : >> { %v2509_v33 = vpop.f32.mrf.mxu1 }
 0x521   : >> { %v2590_v20 = vadd.f32 %v6833_v34, %v2509_v33 }
 0x522   : >> { %v5462_v32 = vpop.f32.mrf.mxu1 }
 0x524   : >> { %v2514_v40 = vpop.f32.mrf.mxu1 }
 0x525   : >> { %v2595_v5 = vadd.f32 %v6835_v38, %v2514_v40 }
 0x526   : >> { %v5465_v45 = vpop.f32.mrf.mxu1 }
 0x528   : >> { %v2673_v6 = vpop.f32.mrf.mxu1 }
 0x529   : >> { %v2687_v19 = vadd.f32 %v2673_v6, %v2585_v3 }
 0x52a   : >> { %v5485_v4 = vpop.f32.mrf.mxu1 }
 0x52b   : >> { %v2779_v0 = vadd.f32 %v6854_v18, %v2687_v19 }
 0x52c   : >> { %v2678_v29 = vpop.f32.mrf.mxu1 }
 0x52d   : >> { %v2688_v2 = vadd.f32 %v2678_v29, %v2590_v20  ;;  %v1308_v20 = vld [vmem:[%s6507_s25 + $0x120] sm:$0xff] }
 0x52e   : >> { %v5488_v7 = vpop.f32.mrf.mxu1 }
 0x52f   : >> { %v2780_v39 = vadd.f32 %v6859_v30, %v2688_v2  ;;  %v1313_v2 = vld [vmem:[%s6507_s25 + $0x148] sm:$0xff] }
 0x530   : >> { %v2683_v53 = vpop.f32.mrf.mxu1 }
 0x531   : >> { %v2689_v24 = vadd.f32 %v2683_v53, %v2595_v5 }
 0x532   : >> { %v5491_v13 = vpop.f32.mrf.mxu1 }
 0x533   : >> { %v2781_v45 = vadd.f32 %v6864_v28, %v2689_v24  ;;  %v7060_v24 = vld [vmem:[%s1335_s20] sm:$0xff]  ;;  %s4702_s20 = scalar_lea.hbm (%p1261_p11), %s7228_s15, %s4954_s30 }
 0x534   : >> { %v2857_v47 = vpop.f32.mrf.mxu1 }
 0x535   : >> { %v2871_v54 = vadd.f32 %v2857_v47, %v2779_v0 }
 0x536   : >> { %v5511_v48 = vpop.f32.mrf.mxu1 }
 0x537   : >> { %v2963_v31 = vadd.f32 %v6872_v21, %v2871_v54  ;;  %v1329_v54 = vld [vmem:[%s6812_s27 + $0x50] sm:$0xff] }
 0x538   : >> { %v2862_v36 = vpop.f32.mrf.mxu1 }
 0x539   : >> { %v2872_v32 = vadd.f32 %v2862_v36, %v2780_v39 }
 0x53a   : >> { %v5514_v9 = vpop.f32.mrf.mxu1 }
 0x53b   : >> { %v2964_v18 = vadd.f32 %v6880_v57, %v2872_v32  ;;  %v3429_v57 = vrot.slane %v6843_v10, %v6199_v56 }
 0x53c   : >> { %v2867_v14 = vpop.f32.mrf.mxu1 }
 0x53d   : >> { %v2873_v6 = vadd.f32 %v2867_v14, %v2781_v45 }
 0x53e   : >> { %v5517_v43 = vpop.f32.mrf.mxu1 }
 0x53f   : >> { %v2965_v7 = vadd.f32 %v6886_v37, %v2873_v6 }
 0x540   : >> { %v3041_v35 = vpop.f32.mrf.mxu1 }
 0x541   : >> { %v3055_v34 = vadd.f32 %v3041_v35, %v2963_v31 }
 0x542   : >> { %v5537_v12 = vpop.f32.mrf.mxu1 }
 0x543   : >> { %v3147_v38 = vadd.f32 %v6902_v1, %v3055_v34 }
 0x544   : >> { %v3046_v22 = vpop.f32.mrf.mxu1 }
 0x545   : >> { %v3056_v29 = vadd.f32 %v3046_v22, %v2964_v18 }
 0x546   : >> { %v5540_v8 = vpop.f32.mrf.mxu1 }
 0x547   : >> { %v3148_v21 = vadd.f32 %v6910_v44, %v3056_v29 }
 0x548   : >> { %v3051_v55 = vpop.f32.mrf.mxu1 }
 0x549   : >> { %v3057_v13 = vadd.f32 %v3051_v55, %v2965_v7  ;;  %v1327_v55 = vld [vmem:[%s6812_s27 + $0x40] sm:$0xff] }
 0x54a   : >> { %v5543_v42 = vpop.f32.mrf.mxu1 }
 0x54b   : >> { %v3149_v9 = vadd.f32 %v6918_v46, %v3057_v13  ;;  %v3439_v42 = vrot.slane %v7060_v24, %v6199_v56  ;;  %v4226_v56 = vld [vmem:[%s7217_s4] sm:$0xff] (%p1261_p11) }
 0x54c   : >> { %v3225_v27 = vpop.f32.mrf.mxu1 }
 0x54d   : >> { %v3239_v30 = vadd.f32 %v3225_v27, %v3147_v38 }
 0x54e   : >> { %v5563_v33 = vpop.f32.mrf.mxu1 }
 0x54f   : >> { %v3331_v48 = vadd.f32 %v6924_v17, %v3239_v30 }
 0x550   : >> { %v3230_v4 = vpop.f32.mrf.mxu1 }
 0x551   : >> { %v3240_v28 = vadd.f32 %v3230_v4, %v3148_v21 }
 0x552   : >> { %v5566_v40 = vpop.f32.mrf.mxu1 }
 0x553   : >> { %v3332_v3 = vadd.f32 %v6932_v26, %v3240_v28  ;;  %v7346_v28 = vld [vmem:[#allocation8_spill] sm:$0xff] }
 0x554   : >> { %v3235_v53 = vpop.f32.mrf.mxu1 }
 0x555   : >> { %v3241_v37 = vadd.f32 %v3235_v53, %v3149_v9 }
 0x556   : >> { %v5569_v47 = vpop.f32.mrf.mxu1 }
 0x557   : >> { %v3333_v17 = vadd.f32 %v6940_v25, %v3241_v37 }
 0x558   : >> { %v3409_v36 = vpop.f32.mrf.mxu1 }
 0x559   : >> { %v3423_v1 = vadd.f32 %v3409_v36, %v3331_v48  ;;  %v3945_v48 = vsub.s32 2, %v7346_v28 }
 0x55a   : >> { %v5589_v14 = vpop.f32.mrf.mxu1 }
 0x55b   : >> { %v3430_v43 = vadd.f32 %v3429_v57, %v3423_v1 }
 0x55c   : >> { %v3414_v35 = vpop.f32.mrf.mxu1 }
 0x55d   : >> { %v3433_v44 = vmax.f32 %v3430_v43, 0.0  ;;  %v3424_v19 = vadd.f32 %v3414_v35, %v3332_v3  ;;  %v3946_v3 = vrot.slane %v6843_v10, %v3945_v48 }
 0x55e   : >> { %v5592_v12 = vpop.f32.mrf.mxu1 }
 0x55f   : >> { %v3431_v22 = vadd.f32 %v3429_v57, %v3424_v19  ;;  %5605 = vmatmul.mubr.msk.f32.vlgmr.msra.gmra.mxu0 %vm507_vm0, %v3433_v44 }
 0x560   : >> { %5628 = vmatpush3.msra.mxu0 %v6999_v58  ;;  %v3419_v46 = vpop.f32.mrf.mxu1  ;;  %5607 = vmatprep.mubr.msk.f32.mxu0 %vm5939_vm5, %v7345_v23  ;;  %v1312_v58 = vld [vmem:[%s6507_s25 + $0x140] sm:$0xff] }
 0x561   : >> { %v3434_v0 = vmax.f32 %v3431_v22, 0.0  ;;  %v3425_v26 = vadd.f32 %v3419_v46, %v3333_v17  ;;  %5629 = vmatprep.subr.mxu0 %v1308_v20 }
 0x562   : >> { %v5595_v8 = vpop.f32.mrf.mxu1  ;;  %5630 = vmatpush3.msra.mxu0 %v1308_v20  ;;  %v2336_v20 = vrot.slane %v7060_v24, %v7344_v41 }
 0x563   : >> { %v3432_v5 = vadd.f32 %v3429_v57, %v3425_v26  ;;  %5608 = vmatmul.mubr.msk.f32.gmra.mxu0 %vm507_vm0, %v3434_v0  ;;  %5641 = vmatprep.subr.mxu0 %v1313_v2  ;;  %v1332_v26 = vld [vmem:[%s6812_s27 + $0x68] sm:$0xff]  ;;  %v1331_v8 = vld [vmem:[%s6812_s27 + $0x60] sm:$0xff] }
 0x564   : >> { %5610 = vmatprep.mubr.msk.f32.mxu0 %vm5939_vm5, %v7345_v23  ;;  %v5619_v39 = vpop.f32.mrf.mxu1 }
 0x565   : >> { %v3435_v25 = vmax.f32 %v3432_v5, 0.0  ;;  %v2418_v5 = vadd.f32 %v7004_v15, %v2336_v20 }
 0x566   : >> { %v3604_v32 = vpop.f32.mrf.mxu1 }
 0x567   : >> { %5611 = vmatmul.mubr.msk.f32.gmra.mxu0 %vm507_vm0, %v3435_v25  ;;  %v2427_v41 = vmax.f32 %v2418_v5, 0.0 }
 0x568   : >> { %5631 = vmatprep.mubr.msk.f32.mxu0 %vm1755_vm4, %v6704_v52  ;;  %v1334_v52 = vld [vmem:[%s6812_s27 + $0x78] sm:$0xff]  ;;  %v5626_v33 = vpop.f32.mrf.mxu1 }
 0x569   : >> { %v3691_v53 = vadd.f32 %v5626_v33, %v5619_v39 }
 0x56a   : >> { %v3685_v38 = vpop.f32.mrf.mxu1 }
 0x56b   : >> { %5632 = vmatmul.mubr.msk.f32.vlgmr.msra.gmra.mxu0 %vm1755_vm4, %v6699_v11  ;;  %v1333_v11 = vld [vmem:[%s6812_s27 + $0x70] sm:$0xff]  ;;  %v3686_v57 = vadd.f32 %v3685_v38, %v3604_v32 }
 0x56c   : >> { %5642 = vmatpush3.msra.mxu0 %v1313_v2  ;;  %5645 = vmatprep.mubr.msk.f32.mxu0 %vm1755_vm4, %v5918_v50  ;;  %v1330_v50 = vld [vmem:[%s6812_s27 + $0x58] sm:$0xff]  ;;  %v5640_v21 = vpop.f32.mrf.mxu1  ;;  %v2413_v2 = vadd.f32 %v7002_v16, %v2336_v20  ;;  %v2423_v16 = vadd.f32 %v7006_v49, %v2336_v20 }
 0x56d   : >> { %5643 = vmatprep.subr.mxu0 %v1312_v58  ;;  %5648 = vmatprep.subr.mxu1 %v1330_v50  ;;  %v4383_v20 = vld [vmem:[%s7226_s13 + $0x38] sm:$0xff] (%p1261_p11) }
 0x56e   : >> { %5644 = vmatpush3.msra.mxu0 %v1312_v58  ;;  %5649 = vmatpush3.msra.mxu1 %v1330_v50  ;;  %v3849_v37 = vpop.f32.mrf.mxu1  ;;  %v2426_v10 = vmax.f32 %v2413_v2, 0.0  ;;  %v2428_v25 = vmax.f32 %v2423_v16, 0.0  ;;  %v7353_v16 = vld [vmem:[#allocation9_spill] sm:$0xff] (%p1261_p11) }
 0x56f   : >> { %5646 = vmatmul.mubr.msk.f32.vlgmr.msra.gmra.mxu0 %vm1755_vm4, %v5914_v51  ;;  %5659 = vmatprep.subr.mxu0 %v7345_v23  ;;  %v1328_v51 = vld [vmem:[%s6812_s27 + $0x48] sm:$0xff]  ;;  %s7354_s27 = sand.u32 (%p1261_p11), 1, %s5902_s19  }
 0x570   : >> { %5663 = vmatprep.mubr.msk.f32.mxu0 %vm5939_vm5, %v7345_v23  ;;  %5660 = vmatpush3.msra.mxu0 %v1334_v52  ;;  %s4691_s16 = scalar_lea.sflag (%p1261_p11), [#allocation3], %s7354_s27 }
 0x571   : >> { %5661 = vmatprep.subr.mxu0 %v7345_v23  ;;  %5650 = vmatprep.subr.mxu1 %v1329_v54 }
 0x572   : >> { %5662 = vmatpush3.msra.mxu0 %v1333_v11  ;;  %5651 = vmatpush3.msra.mxu1 %v1329_v54 }
 0x573   : >> { %5652 = vmatprep.subr.mxu1 %v1328_v51 }
 0x574   : >> { %5653 = vmatpush3.msra.mxu1 %v1328_v51  ;;  %v3954_v51 = vrot.slane %v7060_v24, %v3945_v48  ;;  %v4227_v48 = vld [vmem:[%s7217_s4 + $0x8] sm:$0xff] (%p1261_p11) }
 0x575   : >> { %5654 = vmatprep.subr.mxu1 %v1327_v55 }
 0x576   : >> { %5655 = vmatpush3.msra.mxu1 %v1327_v55  ;;  %v4218_v55 = vsub.s32 3, %v7346_v28 }
 0x577   : >> { %5672 = vmatprep.subr.mxu1 %v7345_v23 }
 0x61f   : >> { %v3515_v31 = vpop.f32.mrf.mxu0 }
 0x620   : >> { %v3516_v27 = vadd.f32 %v3515_v31, %v3439_v42 }
 0x621   : >> { %v5606_v45 = vpop.f32.mrf.mxu0 }
 0x622   : >> { %v3529_v34 = vmax.f32 %v3516_v27, 0.0 }
 0x623   : >> { %v3520_v6 = vpop.f32.mrf.mxu0 }
 0x624   : >> { %v3521_v18 = vadd.f32 %v3520_v6, %v3439_v42  ;;  %5664 = vmatmul.mubr.msk.f32.vlgmr.msra.gmra.mxu0 %vm1755_vm4, %v3529_v34 }
 0x625   : >> { %v5609_v4 = vpop.f32.mrf.mxu0  ;;  %5666 = vmatprep.mubr.msk.f32.mxu0 %vm5939_vm5, %v7345_v23 }
 0x626   : >> { %v3530_v29 = vmax.f32 %v3521_v18, 0.0 }
 0x627   : >> { %v3525_v40 = vpop.f32.mrf.mxu0 }
 0x628   : >> { %v3526_v7 = vadd.f32 %v3525_v40, %v3439_v42  ;;  %5667 = vmatmul.mubr.msk.f32.gmra.mxu0 %vm1755_vm4, %v3530_v29 }
 0x629   : >> { %v5612_v30 = vpop.f32.mrf.mxu0  ;;  %5669 = vmatprep.mubr.msk.f32.mxu0 %vm5939_vm5, %v7345_v23 }
 0x62a   : >> { %v3531_v13 = vmax.f32 %v3526_v7, 0.0 }
 0x62b   : >> { %v5633_v47 = vpop.f32.mrf.mxu0 }
 0x62c   : >> { %v3776_v36 = vadd.f32 %v5633_v47, %v3691_v53  ;;  %5670 = vmatmul.mubr.msk.f32.gmra.mxu0 %vm1755_vm4, %v3531_v13 }
 0x62d   : >> { %v3766_v9 = vpop.f32.mrf.mxu0 }
 0x62e   : >> { %v3775_v1 = vadd.f32 %v3766_v9, %v3686_v57  ;;  %v3859_v14 = vadd.f32 %v5640_v21, %v3776_v36  ;;  %v4381_v9 = vld [vmem:[%s7226_s13 + $0x28] sm:$0xff] (%p1261_p11) }
 0x62f   : >> { %v5647_v43 = vpop.f32.mrf.mxu0 }
 0x630   : >> { %v3942_v35 = vadd.f32 %v5647_v43, %v3859_v14  ;;  %v3858_v44 = vadd.f32 %v3849_v37, %v3775_v1  ;;  %v4380_v1 = vld [vmem:[%s7226_s13 + $0x20] sm:$0xff] (%p1261_p11) }
 0x631   : >> { %v3932_v19 = vpop.f32.mrf.mxu0  ;;  %v4384_v43 = vld [vmem:[%s7227_s14] sm:$0xff] (%p1261_p11) }
 0x632   : >> { %v3941_v12 = vadd.f32 %v3932_v19, %v3858_v44  ;;  %v3948_v22 = vadd.f32 %v3946_v3, %v3942_v35 }
 0x634   : >> { %v3947_v17 = vadd.f32 %v3946_v3, %v3941_v12  ;;  %v3950_v0 = vmax.f32 %v3948_v22, 0.0  ;;  %v4382_v22 = vld [vmem:[%s7226_s13 + $0x30] sm:$0xff] (%p1261_p11) }
 0x636   : >> { %v3949_v46 = vmax.f32 %v3947_v17, 0.0  ;;  %v4534_v17 = vrot.slane (%p1261_p11), %v4384_v43, 1 }
 0x638   : >> { %5656 = vmatprep.mubr.msk.f32.mxu1 %vm507_vm0, %v3949_v46 }
 0x639   : >> { %5657 = vmatmul.mubr.msk.f32.vlgmr.msra.gmra.mxu1 %vm507_vm0, %v3950_v0 }
 0x63a   : >> { %5673 = vmatpush3.msra.mxu1 %v1332_v26  ;;  %5676 = vmatprep.mubr.msk.f32.mxu1 %vm5939_vm5, %v7345_v23 }
 0x63b   : >> { %5674 = vmatprep.subr.mxu1 %v7345_v23 }
 0x63c   : >> { %5675 = vmatpush3.msra.mxu1 %v1331_v8  ;;  %v4610_v8 = vrot.slane (%p1261_p11), %v4384_v43, 2 }
 0x63d   : >> { %5677 = vmatmul.mubr.msk.f32.vlgmr.msra.gmra.mxu1 %vm1755_vm4, %v2426_v10 }
 0x63e   : >> { %5679 = vmatprep.mubr.msk.f32.mxu1 %vm5939_vm5, %v7345_v23 }
 0x641   : >> { %5680 = vmatmul.mubr.msk.f32.gmra.mxu1 %vm1755_vm4, %v2427_v41 }
 0x642   : >> { %5682 = vmatprep.mubr.msk.f32.mxu1 %vm5939_vm5, %v7345_v23  ;;  %v4219_v23 = vrot.slane %v7060_v24, %v4218_v55  ;;  %v7352_v24 = vmov (%p1261_p11), 0.0  }
 0x643   : > { %5685 = vmatprep.subr.mxu0 (%p1261_p11), %v7352_v24  ;;  %5694 = vmatprep.subr.mxu1 (%p1261_p11), %v7352_v24 }
 0x644   : > { %5691 = vmatprep.mubr.msk.f32.mxu0 (%p1261_p11), %vm5937_vm1, %v7352_v24 }
 0x645   : >> { %5683 = vmatmul.mubr.msk.f32.gmra.mxu1 %vm1755_vm4, %v2428_v25 }
 0x646   : > { %5698 = vmatprep.mubr.msk.f32.mxu1 (%p1261_p11), %vm5937_vm1, %v7352_v24 }
 0x6e4   : >> { %v4113_v15 = vpop.f32.mrf.mxu0 }
 0x6e6   : >> { %v5665_v58 = vpop.f32.mrf.mxu0 }
 0x6e8   : >> { %v4118_v52 = vpop.f32.mrf.mxu0 }
 0x6ea   : >> { %v5668_v11 = vpop.f32.mrf.mxu0 }
 0x6ec   : >> { %v4123_v50 = vpop.f32.mrf.mxu0 }
 0x6ee   : >> { %v5671_v54 = vpop.f32.mrf.mxu0 }
 0x6f9   : >> { %v5658_v39 = vpop.f32.mrf.mxu1 }
 0x6fa   : >> { %v4033_v49 = vadd.f32 %v5658_v39, %v3954_v51 }
 0x6fb   : >> { %v4027_v42 = vpop.f32.mrf.mxu1 }
 0x6fc   : >> { %v4037_v32 = vmax.f32 %v4033_v49, 0.0   ;;  %v4028_v31 = vadd.f32 %v4027_v42, %v3954_v51 }
 0x6fd   : >> { %v4202_v27 = vpop.f32.mrf.mxu1 }
 0x6fe   : >> { %v4036_v45 = vmax.f32 %v4028_v31, 0.0   ;;  %v4203_v34 = vadd.f32 %v4202_v27, %v4113_v15  ;;  %v7347_v51 = vmov %v4037_v32  ;;  %5695 = vmatpush3.msra.mxu1 (%p1261_p11), %v4037_v32 }
 0x6ff   : >> { %v5678_v33 = vpop.f32.mrf.mxu1  ;;  %5696 = vmatprep.subr.mxu1 (%p1261_p11), %v7352_v24 }
 0x700   : >> { %v4220_v6 = vadd.f32 %v4219_v23, %v4203_v34  ;;  %5697 = vmatpush3.msra.mxu1 (%p1261_p11), %v4036_v45 }
 0x701   : >> { %v4207_v18 = vpop.f32.mrf.mxu1  ;;  %5699 = vmatmul.mubr.msk.f32.vlgmr.msra.gmra.mxu1 (%p1261_p11), %vm1755_vm4, %v4227_v48  ;;  %5701 = vmatprep.subr.mxu1 (%p1261_p11), %v7352_v24 }
 0x702   : >> { %v4223_v4 = vmax.f32 %v4220_v6, 0.0   ;;  %v4208_v29 = vadd.f32 %v4207_v18, %v4118_v52  ;;  %5702 = vmatpush3.msra.mxu1 (%p1261_p11), %v4379_v59  ;;  %5705 = vmatprep.mubr.msk.f32.mxu1 (%p1261_p11), %vm5937_vm1, %v7352_v24 }
 0x703   : >> { %v5681_v38 = vpop.f32.mrf.mxu1  ;;  %5703 = vmatprep.subr.mxu1 (%p1261_p11), %v7352_v24 }
 0x704   : >> { %v4221_v40 = vadd.f32 %v4219_v23, %v4208_v29  ;;  %5704 = vmatpush3.msra.mxu1 (%p1261_p11), %v4378_v61 }
 0x705   : >> { %v4212_v7 = vpop.f32.mrf.mxu1  ;;  %5715 = vmatprep.subr.mxu1 (%p1261_p11), %v7352_v24 }
 0x706   : >> { %v4224_v30 = vmax.f32 %v4221_v40, 0.0   ;;  %v4213_v53 = vadd.f32 %v4212_v7, %v4123_v50  ;;  %v7348_v50 = vmov %v4036_v45  ;;  %v7351_v7 = vmov %v4223_v4 }
 0x707   : >> { %v5684_v13 = vpop.f32.mrf.mxu1 }
 0x708   : >> { %v4222_v21 = vadd.f32 %v4219_v23, %v4213_v53  ;;  %v7350_v11 = vmov %v4224_v30  ;;  %1263 = sbr.rel (!%p1261_p11) target bundleno = 660 (0x294), region = 126 }
 0x70a   : >> { %v4225_v47 = vmax.f32 %v4222_v21, 0.0  }
 0x70c   : >> { %v7349_v55 = vmov %v4225_v47  ;;  %5686 = vmatpush3.msra.mxu0 (%p1261_p11), %v4225_v47 }
 0x70d   : > { %5687 = vmatprep.subr.mxu0 %v7352_v24 }
 0x70e   : > { %5688 = vmatpush3.msra.mxu0 %v4224_v30 }
 0x70f   : > { %5689 = vmatprep.subr.mxu0 %v7352_v24 }
 0x710   : > { %5690 = vmatpush3.msra.mxu0 %v4223_v4 }
 0x711   : > { %5692 = vmatmul.mubr.msk.f32.vlgmr.msra.gmra.mxu0 %vm1337_vm3, %v4226_v56  ;;  %5708 = vmatprep.subr.mxu0 %v7352_v24 }
 0x712   : > { %5709 = vmatpush3.msra.mxu0 %v4377_v60  ;;  %5712 = vmatprep.mubr.msk.f32.mxu0 %vm5937_vm1, %v7352_v24 }
 0x713   : > { %5710 = vmatprep.subr.mxu0 %v7352_v24 }
 0x714   : > { %5711 = vmatpush3.msra.mxu0 %v4376_v62 }
 0x715   : > { %5722 = vmatprep.subr.mxu0 %v7352_v24 }
 0x7c1   : > { %v4372_v63 = vpop.f32.mrf.mxu1 }
 0x7c2   : > { %5706 = vmatmul.mubr.msk.f32.vlgmr.msra.gmra.mxu1 %vm1755_vm4, %v4372_v63 }
 0x7c3   : > { %v5700_v57 = vpop.f32.mrf.mxu1  ;;  %5719 = vmatprep.mubr.msk.f32.mxu1 %vm5937_vm1, %v7352_v24  ;;  %5716 = vmatpush3.msra.mxu1 %v4381_v9 }
 0x7c4   : > { %5717 = vmatprep.subr.mxu1 %v7352_v24 }
 0x7c5   : > { %5718 = vmatpush3.msra.mxu1 %v4380_v1 }
 0x7d1   : > { %v4298_v28 = vpop.f32.mrf.mxu0 }
 0x7d2   : > { %5713 = vmatmul.mubr.msk.f32.vlgmr.msra.gmra.mxu0 %vm1755_vm4, %v4298_v28 }
 0x7d3   : > { %v5693_v36 = vpop.f32.mrf.mxu0  ;;  %5726 = vmatprep.mubr.msk.f32.mxu0 %vm5937_vm1, %v7352_v24  ;;  %5723 = vmatpush3.msra.mxu0 %v4383_v20 }
 0x7d4   : > { %5724 = vmatprep.subr.mxu0 %v7352_v24 }
 0x7d5   : > { %5725 = vmatpush3.msra.mxu0 %v4382_v22 }
 0x882   : > { %v4454_v14 = vpop.f32.mrf.mxu1 }
 0x884   : > { %v5707_v37 = vpop.f32.mrf.mxu1 }
 0x892   : > { %v4527_v3 = vpop.f32.mrf.mxu0 }
 0x893   : > { %v4528_v35 = vadd.f32 %v4527_v3, %v4454_v14 }
 0x894   : > { %v5714_v44 = vpop.f32.mrf.mxu0 }
 0x895   : > { %v4531_v19 = vadd.f32 %v4528_v35, %v4384_v43 }
 0x897   : > { %v4532_v12 = vmax.f32 %v4531_v19, 0.0 }
 0x899   : > { %5720 = vmatmul.mubr.msk.f32.vlgmr.msra.gmra.mxu1 %vm1755_vm4, %v4532_v12 }
 0x959   : > { %v4605_v46 = vpop.f32.mrf.mxu1 }
 0x95a   : > { %v4606_v2 = vadd.f32 %v4605_v46, %v4534_v17 }
 0x95b   : > { %v5721_v0 = vpop.f32.mrf.mxu1 }
 0x95c   : > { %v4609_v26 = vmax.f32 %v4606_v2, 0.0 }
 0x95e   : > { %5727 = vmatmul.mubr.msk.f32.vlgmr.msra.gmra.mxu0 %vm1755_vm4, %v4609_v26 }
 0xa1e   : > { %v4681_v10 = vpop.f32.mrf.mxu0 }
 0xa1f   : > { %v4682_v5 = vadd.f32 %v4681_v10, %v4610_v8 }
 0xa20   : > { %v5728_v41 = vpop.f32.mrf.mxu0 }
 0xa21   : > { %v4688_v25 = vrot.slane %v4682_v5, %v7353_v16 }
 0xa23   : > { %4689 = vst.msk [vmem:[%s487_s24] sm:$0xff] %vm1755_vm4, %v4688_v25 }
 0xa24   : > { %5839 = shalt.err (!%p5836_p4)
}
 0xa25   : > { %s5840_s30 = scalar_lea.hbm %s4702_s20, 128  ;;  %s5844_s25 = scalar_lea.hbm %s7228_s15, 512 }
 0xa26   : > { %p5841_p7 = scmp.ne.s32.totalorder %s4702_s20, %s5840_s30  ;;  %p5845_p10 = scmp.lt.s32.totalorder %s4702_s20, %s7228_s15 }
 0xa27   : > { %p5846_p11 = scmp.lt.s32.totalorder %s5844_s25, %s5840_s30 }
 0xa28   : > { %p5842_p8 = pnand %p5841_p7, %p6059_p5 }
 0xa29   : > { %p5847_p12 = por %p5846_p11, %p5845_p10 }
 0xa2a   : > { %p5843_p9 = pneg %p5842_p8 }
 0xa2c   : > { %p5848_p13 = pnand %p5847_p12, %p5843_p9 }
 0xa2e   : > { %5851 = shalt.err (!%p5848_p13)
}
 0xa2f   : > { %5735 = dma.vmem_to_hbm [thread:$0]  (%p6059_p5), %s4705_s0, 128, %s4702_s20, %s4691_s16  }
 0xa30 PF: > { %p5741_p0 = scmp.ge.s32.totalorder %s5910_s21, 2  ;;  %s4716_s2 = sand.u32 1, %s5898_s18  }
 0xa31   : > { %s4717_s26 = scalar_lea.sflag [#allocation3], %s4716_s2 }
 0xa32   : > { %p5738_p1 = pnand %p5741_p0, %p6063_p6 }
 0xa34   : > { %p5739_p2 = pneg %p5738_p1 }
 0xa36   : > { %5893 = dma.done.wait (%p5739_p2), %s4717_s26, 128  }
 0xa37   : > { %5895 = vsyncadd (%p5739_p2), %s4717_s26, 4294967168  ;;  %s7355_s21 = sld [smem:[#allocation6_spill]]  ;;  %s7358_s18 = smov %s5902_s19 }
 0xa38   : > { %s7356_s22 = sld [smem:[#allocation5_spill]] }
 0xa39   : > { %s7357_s20 = sld [smem:[#allocation7_spill]] }
 0xa3d   : > { %p25_p3 = scmp.ge.s32.totalorder %s7355_s21, 6  }
 0xa3e   : > { %s7359_s19 = smov %s7356_s22 }
 0xa3f   :  { %27 = sbr.rel (!%p25_p3) target bundleno = 7 (0x7), region = 137 }
 0xa44   :  { %4722 = vsyncpa [#allocation3], 1 }
 0xa45   :  { %4724 = vsyncpa [#allocation3 + $0x1], 1 }

</bundles_post_ra>
